<compile_context>
chip_gen: v6e
topology: v6e:2x2x1
jax: 0.10.0
libtpu: 0.0.40
codegen_flags: <defaults>
</compile_context>

<pallas_src>
import functools
import math

import jax
import jax.numpy as jnp
from jax.experimental import pallas as pl
from jax.experimental.pallas import tpu as pltpu


# ------------------------------ fused kernel -------------------------------

def _encoder_kernel(x_ref, inc_wt_ref, inc_b_ref,
                    qkv_wt_ref, out_wt_ref, ff1_wt_ref, ff2_wt_ref, vec_ref,
                    o_ref, *, S, H, dh, dff, L, eps):
    d = H * dh

    # ---- input projection Linear(12 -> d_model) for this batch block ----
    x = x_ref[0]                                                   # (S, F)
    h = (jnp.dot(x, inc_wt_ref[...], preferred_element_type=jnp.float32)
         + inc_b_ref[...])                                         # (S, d)

    # ---- encoder layers: trace-time unrolled, weights resident in VMEM ----
    for li in range(L):
        qkv_w = qkv_wt_ref[li]                                     # (d, 3d)
        out_w = out_wt_ref[li]                                     # (d, d)
        ff1_w = ff1_wt_ref[li]                                     # (d, dff)
        ff2_w = ff2_wt_ref[li]                                     # (dff, d)

        vec = vec_ref[li]                                          # (8, 128)
        qkv_b = vec[0:1, :3 * d]
        out_b = vec[1:2, :d]
        ff1_b = vec[2:3, :dff]
        ff2_b = vec[3:4, :d]
        ln1_g = vec[4:5, :d]
        ln1_b = vec[5:6, :d]
        ln2_g = vec[6:7, :d]
        ln2_b = vec[7:8, :d]

        # ---- fused QKV projection (1/sqrt(dh) already folded into Q cols) ----
        qkv = (jnp.dot(h, qkv_w, preferred_element_type=jnp.float32)
               + qkv_b)                                            # (S, 3d)

        # ---- multi-head attention: per-head score tiles, ONE batched softmax ----
        scores = []
        v_heads = []
        for hh in range(H):                    # unrolled at trace time
            c0 = hh * dh
            q_h = qkv[:, c0:c0 + dh]                               # (S, dh)
            k_h = qkv[:, d + c0:d + c0 + dh]
            v_heads.append(qkv[:, 2 * d + c0:2 * d + c0 + dh])
            # q @ k^T as an NT contraction (no explicit transpose)
            scores.append(jax.lax.dot_general(
                q_h, k_h, (((1,), (1,)), ((), ())),
                preferred_element_type=jnp.float32))               # (S, S)

        s = jnp.concatenate(scores, axis=0)                        # (H*S, S)
        s = s - jnp.max(s, axis=-1, keepdims=True)
        p = jnp.exp(s)
        # approx=False keeps the tight 1e-4 check vs the reference;
        # approx=True (EUP vrcp) is a valid micro-opt at looser tolerance.
        p = p * pl.reciprocal(jnp.sum(p, axis=-1, keepdims=True), approx=False)

        a = jnp.concatenate(
            [jnp.dot(p[hh * S:(hh + 1) * S, :], v_heads[hh],
                     preferred_element_type=jnp.float32)
             for hh in range(H)],
            axis=1)                                                # (S, d)

        attn = (jnp.dot(a, out_w, preferred_element_type=jnp.float32)
                + out_b)

        # ---- post-norm LN1(h + attn) ----
        y = h + attn
        mean = jnp.mean(y, axis=-1, keepdims=True)
        var = jnp.mean(jnp.square(y - mean), axis=-1, keepdims=True)
        h = (y - mean) * jax.lax.rsqrt(var + eps) * ln1_g + ln1_b

        # ---- feed-forward (relu) ----
        ff = jnp.maximum(
            jnp.dot(h, ff1_w, preferred_element_type=jnp.float32) + ff1_b, 0.0)
        ff = jnp.dot(ff, ff2_w, preferred_element_type=jnp.float32) + ff2_b

        # ---- post-norm LN2(h + ff) ----
        y = h + ff
        mean = jnp.mean(y, axis=-1, keepdims=True)
        var = jnp.mean(jnp.square(y - mean), axis=-1, keepdims=True)
        h = (y - mean) * jax.lax.rsqrt(var + eps) * ln2_g + ln2_b

    o_ref[0] = h


# ------------------------------ forward pass -------------------------------

def transformer_encoder_forward(x, kparams, settings):
    B, S, F = x.shape
    d = settings["d_model"]
    H = settings["nhead"]
    dh = d // H
    dff = settings["dim_feedforward"]
    L = settings["num_encoder_layers"]

    kern = functools.partial(_encoder_kernel,
                             S=S, H=H, dh=dh, dff=dff, L=L, eps=1e-5)

    out = pl.pallas_call(
        kern,
        out_shape=jax.ShapeDtypeStruct((B, S, d), jnp.float32),
        grid_spec=pltpu.PrefetchScalarGridSpec(
            num_scalar_prefetch=0,
            grid=(B,),                              # batch axis only; layers
                                                    # are an in-kernel loop
            in_specs=[
                pl.BlockSpec((1, S, F), lambda b: (b, 0, 0)),      # x (per-batch)
                pl.BlockSpec((F, d), lambda b: (0, 0)),            # inc_wt
                pl.BlockSpec((1, d), lambda b: (0, 0)),            # inc_b
                pl.BlockSpec((L, d, 3 * d), lambda b: (0, 0, 0)),  # qkv_wt
                pl.BlockSpec((L, d, d), lambda b: (0, 0, 0)),      # out_wt
                pl.BlockSpec((L, d, dff), lambda b: (0, 0, 0)),    # ff1_wt
                pl.BlockSpec((L, dff, d), lambda b: (0, 0, 0)),    # ff2_wt
                pl.BlockSpec((L, 8, 128), lambda b: (0, 0, 0)),    # packed vecs
            ],
            out_specs=pl.BlockSpec((1, S, d), lambda b: (b, 0, 0)),
        ),
        compiler_params=pltpu.CompilerParams(
            dimension_semantics=("parallel",)),     # v7x: one batch per core
    )(
        x,
        kparams["inc_wt"], kparams["inc_b"],
        kparams["qkv_wt"], kparams["out_wt"],
        kparams["ff1_wt"], kparams["ff2_wt"],
        kparams["vecs"],
    )
    return out


# --------------------------- parameter construction ------------------------

def init_params(key, settings, in_features=12):
    """PyTorch-semantics weights, stored pre-transposed as (in, out) and
    stacked over layers (attention scale NOT folded here)."""
    d = settings["d_model"]
    dff = settings["dim_feedforward"]
    L = settings["num_encoder_layers"]

    def nrm(k, shape, scale=0.05):
        return (scale * jax.random.normal(k, shape)).astype(jnp.float32)

    keys = jax.random.split(key, 2 + L)
    params = {
        "inc_wt": nrm(keys[0], (in_features, d)),
        "inc_b": nrm(keys[1], (1, d)),
    }
    per = {k: [] for k in ("qkv_wt", "qkv_b", "out_wt", "out_b",
                           "ff1_wt", "ff1_b", "ff2_wt", "ff2_b",
                           "ln1_g", "ln1_b", "ln2_g", "ln2_b")}
    for li in range(L):
        lk = jax.random.split(keys[2 + li], 8)
        per["qkv_wt"].append(nrm(lk[0], (d, 3 * d)))
        per["qkv_b"].append(nrm(lk[1], (1, 3 * d)))
        per["out_wt"].append(nrm(lk[2], (d, d)))
        per["out_b"].append(nrm(lk[3], (1, d)))
        per["ff1_wt"].append(nrm(lk[4], (d, dff)))
        per["ff1_b"].append(nrm(lk[5], (1, dff)))
        per["ff2_wt"].append(nrm(lk[6], (dff, d)))
        per["ff2_b"].append(nrm(lk[7], (1, d)))
        per["ln1_g"].append(jnp.ones((1, d), jnp.float32))
        per["ln1_b"].append(jnp.zeros((1, d), jnp.float32))
        per["ln2_g"].append(jnp.ones((1, d), jnp.float32))
        per["ln2_b"].append(jnp.zeros((1, d), jnp.float32))
    for k, v in per.items():
        params[k] = jnp.stack(v, axis=0)
    return params


def fold_for_kernel(params, settings):
    """One-time (outside jit) repacking for the fused kernel:
       * fold 1/sqrt(dh) into the Q columns of qkv weight AND bias,
       * pack the 8 small per-layer vectors into one lane-padded (L, 8, 128)
         slab so they travel as a single DMA / single kernel argument."""
    d = settings["d_model"]
    H = settings["nhead"]
    dh = d // H
    scale = 1.0 / math.sqrt(dh)

    qkv_wt = params["qkv_wt"].at[:, :, :d].multiply(scale)
    qkv_b = params["qkv_b"].at[:, :, :d].multiply(scale)

    def pad128(v):                                  # (L, 1, w) -> (L, 1, 128)
        return jnp.pad(v, ((0, 0), (0, 0), (0, 128 - v.shape[-1])))

    vecs = jnp.concatenate(
        [pad128(qkv_b), pad128(params["out_b"]), pad128(params["ff1_b"]),
         pad128(params["ff2_b"]), pad128(params["ln1_g"]), pad128(params["ln1_b"]),
         pad128(params["ln2_g"]), pad128(params["ln2_b"])],
        axis=1).astype(jnp.float32)                 # (L, 8, 128)

    return {
        "inc_wt": params["inc_wt"], "inc_b": params["inc_b"],
        "qkv_wt": qkv_wt, "out_wt": params["out_wt"],
        "ff1_wt": params["ff1_wt"], "ff2_wt": params["ff2_wt"],
        "vecs": vecs,
    }


# ---------------------------- pure-JAX reference ----------------------------

def reference_forward(x, params, settings):
    B, S, _ = x.shape
    d = settings["d_model"]
    H = settings["nhead"]
    dh = d // H
    L = settings["num_encoder_layers"]
    scale = 1.0 / math.sqrt(dh)

    def ln(z, g, b, eps=1e-5):
        m = z.mean(-1, keepdims=True)
        v = ((z - m) ** 2).mean(-1, keepdims=True)
        return (z - m) / jnp.sqrt(v + eps) * g + b

    h = x @ params["inc_wt"] + params["inc_b"]
    for li in range(L):
        qkv = (h @ params["qkv_wt"][li] + params["qkv_b"][li]).reshape(B, S, 3, H, dh)
        q = qkv[:, :, 0].transpose(0, 2, 1, 3)
        k = qkv[:, :, 1].transpose(0, 2, 1, 3)
        v = qkv[:, :, 2].transpose(0, 2, 1, 3)
        s = jnp.einsum("bhqd,bhkd->bhqk", q, k) * scale
        p = jax.nn.softmax(s, axis=-1)
        a = jnp.einsum("bhqk,bhkd->bhqd", p, v).transpose(0, 2, 1, 3).reshape(B, S, d)
        a = a @ params["out_wt"][li] + params["out_b"][li]
        h = ln(h + a, params["ln1_g"][li], params["ln1_b"][li])
        ff = jnp.maximum(h @ params["ff1_wt"][li] + params["ff1_b"][li], 0.0)
        ff = ff @ params["ff2_wt"][li] + params["ff2_b"][li]
        h = ln(h + ff, params["ln2_g"][li], params["ln2_b"][li])
    return h


# ----------------------------------- main -----------------------------------

if __name__ == "__main__":
    settings = {
        "d_model": 32,
        "nhead": 4,
        "dim_feedforward": 64,
        "transformer_dropout": 0.0,   # dropout off => deterministic forward
        "num_encoder_layers": 2,
    }

    key = jax.random.PRNGKey(0)
    kx, kp = jax.random.split(key)
    B, S, F = 2, 8, 12
    x = jax.random.normal(kx, (B, S, F), dtype=jnp.float32)

    params = init_params(kp, settings, in_features=F)
    kparams = fold_for_kernel(params, settings)      # one-time, outside jit

    fwd = jax.jit(functools.partial(transformer_encoder_forward, settings=settings))
    out = jax.block_until_ready(fwd(x, kparams))

    ref = reference_forward(x, params, settings)
    assert out.shape == (B, S, settings["d_model"])
    assert jnp.allclose(out, ref, rtol=1e-4, atol=1e-4), "mismatch vs pure-JAX reference"

    print("KERNEL_OK")
</pallas_src>

<mosaic_0001>
module attributes {stable_mosaic.version = 11 : i64} {
  func.func @_encoder_kernel(%arg0: i32, %arg1: memref<1x8x12xf32, #tpu.memory_space<vmem>>, %arg2: memref<12x32xf32, #tpu.memory_space<vmem>>, %arg3: memref<1x32xf32, #tpu.memory_space<vmem>>, %arg4: memref<2x32x96xf32, #tpu.memory_space<vmem>>, %arg5: memref<2x32x32xf32, #tpu.memory_space<vmem>>, %arg6: memref<2x32x64xf32, #tpu.memory_space<vmem>>, %arg7: memref<2x64x32xf32, #tpu.memory_space<vmem>>, %arg8: memref<2x8x128xf32, #tpu.memory_space<vmem>>, %arg9: memref<1x8x32xf32, #tpu.memory_space<vmem>>) attributes {dimension_semantics = [#tpu.dimension_semantics<parallel>], iteration_bounds = array<i64: 2>, scalar_prefetch = 0 : i64, scratch_operands = 0 : i64, tpu.core_type = #tpu.core_type<tc>, window_params = [{transform_indices = @transform_0, window_bounds = array<i64: 1, 8, 12>}, {pipeline_mode = #tpu.pipeline_mode<synchronous>, transform_indices = @transform_1, window_bounds = array<i64: 12, 32>}, {pipeline_mode = #tpu.pipeline_mode<synchronous>, transform_indices = @transform_2, window_bounds = array<i64: 1, 32>}, {pipeline_mode = #tpu.pipeline_mode<synchronous>, transform_indices = @transform_3, window_bounds = array<i64: 2, 32, 96>}, {pipeline_mode = #tpu.pipeline_mode<synchronous>, transform_indices = @transform_4, window_bounds = array<i64: 2, 32, 32>}, {pipeline_mode = #tpu.pipeline_mode<synchronous>, transform_indices = @transform_5, window_bounds = array<i64: 2, 32, 64>}, {pipeline_mode = #tpu.pipeline_mode<synchronous>, transform_indices = @transform_6, window_bounds = array<i64: 2, 64, 32>}, {pipeline_mode = #tpu.pipeline_mode<synchronous>, transform_indices = @transform_7, window_bounds = array<i64: 2, 8, 128>}, {transform_indices = @transform_8, window_bounds = array<i64: 1, 8, 32>}]} {
    %c0 = arith.constant 0 : index
    %c0_0 = arith.constant 0 : index
    %c0_1 = arith.constant 0 : index
    %0 = vector.load %arg1[%c0, %c0_0, %c0_1] : memref<1x8x12xf32, #tpu.memory_space<vmem>>, vector<1x8x12xf32>
    %1 = vector.shape_cast %0 : vector<1x8x12xf32> to vector<8x12xf32>
    %c0_2 = arith.constant 0 : index
    %c0_3 = arith.constant 0 : index
    %2 = vector.load %arg2[%c0_2, %c0_3] : memref<12x32xf32, #tpu.memory_space<vmem>>, vector<12x32xf32>
    %cst = arith.constant dense<0.000000e+00> : vector<8x32xf32>
    %3 = tpu.matmul %1, %2, %cst {dimension_numbers = #tpu.dot_dimension_numbers<[1], [0], [0], [1], [0, 0, 1, 1], [], []>} : vector<8x12xf32>, vector<12x32xf32>, vector<8x32xf32> -> vector<8x32xf32>
    %c0_4 = arith.constant 0 : index
    %c0_5 = arith.constant 0 : index
    %4 = vector.load %arg3[%c0_4, %c0_5] : memref<1x32xf32, #tpu.memory_space<vmem>>, vector<1x32xf32>
    %5 = vector.broadcast %4 : vector<1x32xf32> to vector<8x32xf32>
    %6 = arith.addf %3, %5 : vector<8x32xf32>
    %c0_6 = arith.constant 0 : index
    %c0_7 = arith.constant 0 : index
    %c0_8 = arith.constant 0 : index
    %7 = vector.load %arg4[%c0_6, %c0_7, %c0_8] : memref<2x32x96xf32, #tpu.memory_space<vmem>>, vector<1x32x96xf32>
    %8 = vector.shape_cast %7 : vector<1x32x96xf32> to vector<32x96xf32>
    %c0_9 = arith.constant 0 : index
    %c0_10 = arith.constant 0 : index
    %c0_11 = arith.constant 0 : index
    %9 = vector.load %arg5[%c0_9, %c0_10, %c0_11] : memref<2x32x32xf32, #tpu.memory_space<vmem>>, vector<1x32x32xf32>
    %10 = vector.shape_cast %9 : vector<1x32x32xf32> to vector<32x32xf32>
    %c0_12 = arith.constant 0 : index
    %c0_13 = arith.constant 0 : index
    %c0_14 = arith.constant 0 : index
    %11 = vector.load %arg6[%c0_12, %c0_13, %c0_14] : memref<2x32x64xf32, #tpu.memory_space<vmem>>, vector<1x32x64xf32>
    %12 = vector.shape_cast %11 : vector<1x32x64xf32> to vector<32x64xf32>
    %c0_15 = arith.constant 0 : index
    %c0_16 = arith.constant 0 : index
    %c0_17 = arith.constant 0 : index
    %13 = vector.load %arg7[%c0_15, %c0_16, %c0_17] : memref<2x64x32xf32, #tpu.memory_space<vmem>>, vector<1x64x32xf32>
    %14 = vector.shape_cast %13 : vector<1x64x32xf32> to vector<64x32xf32>
    %c0_18 = arith.constant 0 : index
    %c0_19 = arith.constant 0 : index
    %c0_20 = arith.constant 0 : index
    %15 = vector.load %arg8[%c0_18, %c0_19, %c0_20] : memref<2x8x128xf32, #tpu.memory_space<vmem>>, vector<1x8x128xf32>
    %16 = vector.shape_cast %15 : vector<1x8x128xf32> to vector<8x128xf32>
    %17 = vector.extract_strided_slice %16 {offsets = [0, 0], sizes = [1, 96], strides = [1, 1]} : vector<8x128xf32> to vector<1x96xf32>
    %18 = vector.extract_strided_slice %16 {offsets = [1, 0], sizes = [1, 32], strides = [1, 1]} : vector<8x128xf32> to vector<1x32xf32>
    %19 = vector.extract_strided_slice %16 {offsets = [2, 0], sizes = [1, 64], strides = [1, 1]} : vector<8x128xf32> to vector<1x64xf32>
    %20 = vector.extract_strided_slice %16 {offsets = [3, 0], sizes = [1, 32], strides = [1, 1]} : vector<8x128xf32> to vector<1x32xf32>
    %21 = vector.extract_strided_slice %16 {offsets = [4, 0], sizes = [1, 32], strides = [1, 1]} : vector<8x128xf32> to vector<1x32xf32>
    %22 = vector.extract_strided_slice %16 {offsets = [5, 0], sizes = [1, 32], strides = [1, 1]} : vector<8x128xf32> to vector<1x32xf32>
    %23 = vector.extract_strided_slice %16 {offsets = [6, 0], sizes = [1, 32], strides = [1, 1]} : vector<8x128xf32> to vector<1x32xf32>
    %24 = vector.extract_strided_slice %16 {offsets = [7, 0], sizes = [1, 32], strides = [1, 1]} : vector<8x128xf32> to vector<1x32xf32>
    %cst_21 = arith.constant dense<0.000000e+00> : vector<8x96xf32>
    %25 = tpu.matmul %6, %8, %cst_21 {dimension_numbers = #tpu.dot_dimension_numbers<[1], [0], [0], [1], [0, 0, 1, 1], [], []>} : vector<8x32xf32>, vector<32x96xf32>, vector<8x96xf32> -> vector<8x96xf32>
    %26 = vector.broadcast %17 : vector<1x96xf32> to vector<8x96xf32>
    %27 = arith.addf %25, %26 : vector<8x96xf32>
    %28 = vector.extract_strided_slice %27 {offsets = [0, 0], sizes = [8, 8], strides = [1, 1]} : vector<8x96xf32> to vector<8x8xf32>
    %29 = vector.extract_strided_slice %27 {offsets = [0, 32], sizes = [8, 8], strides = [1, 1]} : vector<8x96xf32> to vector<8x8xf32>
    %30 = vector.extract_strided_slice %27 {offsets = [0, 64], sizes = [8, 8], strides = [1, 1]} : vector<8x96xf32> to vector<8x8xf32>
    %cst_22 = arith.constant dense<0.000000e+00> : vector<8x8xf32>
    %31 = tpu.matmul %28, %29, %cst_22 {dimension_numbers = #tpu.dot_dimension_numbers<[1], [1], [0], [0], [0, 0, 1, 0], [], []>} : vector<8x8xf32>, vector<8x8xf32>, vector<8x8xf32> -> vector<8x8xf32>
    %32 = vector.extract_strided_slice %27 {offsets = [0, 8], sizes = [8, 8], strides = [1, 1]} : vector<8x96xf32> to vector<8x8xf32>
    %33 = vector.extract_strided_slice %27 {offsets = [0, 40], sizes = [8, 8], strides = [1, 1]} : vector<8x96xf32> to vector<8x8xf32>
    %34 = vector.extract_strided_slice %27 {offsets = [0, 72], sizes = [8, 8], strides = [1, 1]} : vector<8x96xf32> to vector<8x8xf32>
    %cst_23 = arith.constant dense<0.000000e+00> : vector<8x8xf32>
    %35 = tpu.matmul %32, %33, %cst_23 {dimension_numbers = #tpu.dot_dimension_numbers<[1], [1], [0], [0], [0, 0, 1, 0], [], []>} : vector<8x8xf32>, vector<8x8xf32>, vector<8x8xf32> -> vector<8x8xf32>
    %36 = vector.extract_strided_slice %27 {offsets = [0, 16], sizes = [8, 8], strides = [1, 1]} : vector<8x96xf32> to vector<8x8xf32>
    %37 = vector.extract_strided_slice %27 {offsets = [0, 48], sizes = [8, 8], strides = [1, 1]} : vector<8x96xf32> to vector<8x8xf32>
    %38 = vector.extract_strided_slice %27 {offsets = [0, 80], sizes = [8, 8], strides = [1, 1]} : vector<8x96xf32> to vector<8x8xf32>
    %cst_24 = arith.constant dense<0.000000e+00> : vector<8x8xf32>
    %39 = tpu.matmul %36, %37, %cst_24 {dimension_numbers = #tpu.dot_dimension_numbers<[1], [1], [0], [0], [0, 0, 1, 0], [], []>} : vector<8x8xf32>, vector<8x8xf32>, vector<8x8xf32> -> vector<8x8xf32>
    %40 = vector.extract_strided_slice %27 {offsets = [0, 24], sizes = [8, 8], strides = [1, 1]} : vector<8x96xf32> to vector<8x8xf32>
    %41 = vector.extract_strided_slice %27 {offsets = [0, 56], sizes = [8, 8], strides = [1, 1]} : vector<8x96xf32> to vector<8x8xf32>
    %42 = vector.extract_strided_slice %27 {offsets = [0, 88], sizes = [8, 8], strides = [1, 1]} : vector<8x96xf32> to vector<8x8xf32>
    %cst_25 = arith.constant dense<0.000000e+00> : vector<8x8xf32>
    %43 = tpu.matmul %40, %41, %cst_25 {dimension_numbers = #tpu.dot_dimension_numbers<[1], [1], [0], [0], [0, 0, 1, 0], [], []>} : vector<8x8xf32>, vector<8x8xf32>, vector<8x8xf32> -> vector<8x8xf32>
    %44 = tpu.concatenate %31, %35, %39, %43 in 0 : vector<8x8xf32>, vector<8x8xf32>, vector<8x8xf32>, vector<8x8xf32> -> vector<32x8xf32>
    %cst_26 = arith.constant dense<0xFF800000> : vector<32xf32>
    %45 = vector.multi_reduction <maximumf>, %44, %cst_26 [1] : vector<32x8xf32> to vector<32xf32>
    %46 = vector.shape_cast %45 : vector<32xf32> to vector<32x1xf32>
    %47 = vector.broadcast %46 : vector<32x1xf32> to vector<32x8xf32>
    %48 = arith.subf %44, %47 : vector<32x8xf32>
    %49 = math.exp %48 : vector<32x8xf32>
    %cst_27 = arith.constant dense<0.000000e+00> : vector<32xf32>
    %50 = vector.multi_reduction <add>, %49, %cst_27 [1] : vector<32x8xf32> to vector<32xf32>
    %51 = vector.shape_cast %50 : vector<32xf32> to vector<32x1xf32>
    %52 = tpu.reciprocal %51 : vector<32x1xf32> -> vector<32x1xf32>
    %53 = vector.broadcast %52 : vector<32x1xf32> to vector<32x8xf32>
    %54 = arith.mulf %49, %53 : vector<32x8xf32>
    %55 = vector.extract_strided_slice %54 {offsets = [0, 0], sizes = [8, 8], strides = [1, 1]} : vector<32x8xf32> to vector<8x8xf32>
    %cst_28 = arith.constant dense<0.000000e+00> : vector<8x8xf32>
    %56 = tpu.matmul %55, %30, %cst_28 {dimension_numbers = #tpu.dot_dimension_numbers<[1], [0], [0], [1], [0, 0, 1, 1], [], []>} : vector<8x8xf32>, vector<8x8xf32>, vector<8x8xf32> -> vector<8x8xf32>
    %57 = vector.extract_strided_slice %54 {offsets = [8, 0], sizes = [8, 8], strides = [1, 1]} : vector<32x8xf32> to vector<8x8xf32>
    %cst_29 = arith.constant dense<0.000000e+00> : vector<8x8xf32>
    %58 = tpu.matmul %57, %34, %cst_29 {dimension_numbers = #tpu.dot_dimension_numbers<[1], [0], [0], [1], [0, 0, 1, 1], [], []>} : vector<8x8xf32>, vector<8x8xf32>, vector<8x8xf32> -> vector<8x8xf32>
    %59 = vector.extract_strided_slice %54 {offsets = [16, 0], sizes = [8, 8], strides = [1, 1]} : vector<32x8xf32> to vector<8x8xf32>
    %cst_30 = arith.constant dense<0.000000e+00> : vector<8x8xf32>
    %60 = tpu.matmul %59, %38, %cst_30 {dimension_numbers = #tpu.dot_dimension_numbers<[1], [0], [0], [1], [0, 0, 1, 1], [], []>} : vector<8x8xf32>, vector<8x8xf32>, vector<8x8xf32> -> vector<8x8xf32>
    %61 = vector.extract_strided_slice %54 {offsets = [24, 0], sizes = [8, 8], strides = [1, 1]} : vector<32x8xf32> to vector<8x8xf32>
    %cst_31 = arith.constant dense<0.000000e+00> : vector<8x8xf32>
    %62 = tpu.matmul %61, %42, %cst_31 {dimension_numbers = #tpu.dot_dimension_numbers<[1], [0], [0], [1], [0, 0, 1, 1], [], []>} : vector<8x8xf32>, vector<8x8xf32>, vector<8x8xf32> -> vector<8x8xf32>
    %63 = tpu.concatenate %56, %58, %60, %62 in 1 : vector<8x8xf32>, vector<8x8xf32>, vector<8x8xf32>, vector<8x8xf32> -> vector<8x32xf32>
    %cst_32 = arith.constant dense<0.000000e+00> : vector<8x32xf32>
    %64 = tpu.matmul %63, %10, %cst_32 {dimension_numbers = #tpu.dot_dimension_numbers<[1], [0], [0], [1], [0, 0, 1, 1], [], []>} : vector<8x32xf32>, vector<32x32xf32>, vector<8x32xf32> -> vector<8x32xf32>
    %65 = vector.broadcast %18 : vector<1x32xf32> to vector<8x32xf32>
    %66 = arith.addf %64, %65 : vector<8x32xf32>
    %67 = arith.addf %6, %66 : vector<8x32xf32>
    %cst_33 = arith.constant dense<0.000000e+00> : vector<8xf32>
    %68 = vector.multi_reduction <add>, %67, %cst_33 [1] : vector<8x32xf32> to vector<8xf32>
    %69 = vector.shape_cast %68 : vector<8xf32> to vector<8x1xf32>
    %cst_34 = arith.constant 3.200000e+01 : f32
    %70 = vector.broadcast %cst_34 : f32 to vector<8x1xf32>
    %71 = arith.divf %69, %70 : vector<8x1xf32>
    %72 = vector.broadcast %71 : vector<8x1xf32> to vector<8x32xf32>
    %73 = arith.subf %67, %72 : vector<8x32xf32>
    %74 = arith.mulf %73, %73 : vector<8x32xf32>
    %cst_35 = arith.constant dense<0.000000e+00> : vector<8xf32>
    %75 = vector.multi_reduction <add>, %74, %cst_35 [1] : vector<8x32xf32> to vector<8xf32>
    %76 = vector.shape_cast %75 : vector<8xf32> to vector<8x1xf32>
    %cst_36 = arith.constant 3.200000e+01 : f32
    %77 = vector.broadcast %cst_36 : f32 to vector<8x1xf32>
    %78 = arith.divf %76, %77 : vector<8x1xf32>
    %79 = vector.broadcast %71 : vector<8x1xf32> to vector<8x32xf32>
    %80 = arith.subf %67, %79 : vector<8x32xf32>
    %cst_37 = arith.constant 9.99999974E-6 : f32
    %81 = vector.broadcast %cst_37 : f32 to vector<8x1xf32>
    %82 = arith.addf %78, %81 : vector<8x1xf32>
    %83 = math.rsqrt %82 : vector<8x1xf32>
    %84 = vector.broadcast %83 : vector<8x1xf32> to vector<8x32xf32>
    %85 = arith.mulf %80, %84 : vector<8x32xf32>
    %86 = vector.broadcast %21 : vector<1x32xf32> to vector<8x32xf32>
    %87 = arith.mulf %85, %86 : vector<8x32xf32>
    %88 = vector.broadcast %22 : vector<1x32xf32> to vector<8x32xf32>
    %89 = arith.addf %87, %88 : vector<8x32xf32>
    %cst_38 = arith.constant dense<0.000000e+00> : vector<8x64xf32>
    %90 = tpu.matmul %89, %12, %cst_38 {dimension_numbers = #tpu.dot_dimension_numbers<[1], [0], [0], [1], [0, 0, 1, 1], [], []>} : vector<8x32xf32>, vector<32x64xf32>, vector<8x64xf32> -> vector<8x64xf32>
    %91 = vector.broadcast %19 : vector<1x64xf32> to vector<8x64xf32>
    %92 = arith.addf %90, %91 : vector<8x64xf32>
    %cst_39 = arith.constant 0.000000e+00 : f32
    %93 = vector.broadcast %cst_39 : f32 to vector<8x64xf32>
    %94 = arith.maximumf %92, %93 : vector<8x64xf32>
    %cst_40 = arith.constant dense<0.000000e+00> : vector<8x32xf32>
    %95 = tpu.matmul %94, %14, %cst_40 {dimension_numbers = #tpu.dot_dimension_numbers<[1], [0], [0], [1], [0, 0, 1, 1], [], []>} : vector<8x64xf32>, vector<64x32xf32>, vector<8x32xf32> -> vector<8x32xf32>
    %96 = vector.broadcast %20 : vector<1x32xf32> to vector<8x32xf32>
    %97 = arith.addf %95, %96 : vector<8x32xf32>
    %98 = arith.addf %89, %97 : vector<8x32xf32>
    %cst_41 = arith.constant dense<0.000000e+00> : vector<8xf32>
    %99 = vector.multi_reduction <add>, %98, %cst_41 [1] : vector<8x32xf32> to vector<8xf32>
    %100 = vector.shape_cast %99 : vector<8xf32> to vector<8x1xf32>
    %cst_42 = arith.constant 3.200000e+01 : f32
    %101 = vector.broadcast %cst_42 : f32 to vector<8x1xf32>
    %102 = arith.divf %100, %101 : vector<8x1xf32>
    %103 = vector.broadcast %102 : vector<8x1xf32> to vector<8x32xf32>
    %104 = arith.subf %98, %103 : vector<8x32xf32>
    %105 = arith.mulf %104, %104 : vector<8x32xf32>
    %cst_43 = arith.constant dense<0.000000e+00> : vector<8xf32>
    %106 = vector.multi_reduction <add>, %105, %cst_43 [1] : vector<8x32xf32> to vector<8xf32>
    %107 = vector.shape_cast %106 : vector<8xf32> to vector<8x1xf32>
    %cst_44 = arith.constant 3.200000e+01 : f32
    %108 = vector.broadcast %cst_44 : f32 to vector<8x1xf32>
    %109 = arith.divf %107, %108 : vector<8x1xf32>
    %110 = vector.broadcast %102 : vector<8x1xf32> to vector<8x32xf32>
    %111 = arith.subf %98, %110 : vector<8x32xf32>
    %cst_45 = arith.constant 9.99999974E-6 : f32
    %112 = vector.broadcast %cst_45 : f32 to vector<8x1xf32>
    %113 = arith.addf %109, %112 : vector<8x1xf32>
    %114 = math.rsqrt %113 : vector<8x1xf32>
    %115 = vector.broadcast %114 : vector<8x1xf32> to vector<8x32xf32>
    %116 = arith.mulf %111, %115 : vector<8x32xf32>
    %117 = vector.broadcast %23 : vector<1x32xf32> to vector<8x32xf32>
    %118 = arith.mulf %116, %117 : vector<8x32xf32>
    %119 = vector.broadcast %24 : vector<1x32xf32> to vector<8x32xf32>
    %120 = arith.addf %118, %119 : vector<8x32xf32>
    %c1 = arith.constant 1 : index
    %c0_46 = arith.constant 0 : index
    %c0_47 = arith.constant 0 : index
    %121 = vector.load %arg4[%c1, %c0_46, %c0_47] : memref<2x32x96xf32, #tpu.memory_space<vmem>>, vector<1x32x96xf32>
    %122 = vector.shape_cast %121 : vector<1x32x96xf32> to vector<32x96xf32>
    %c1_48 = arith.constant 1 : index
    %c0_49 = arith.constant 0 : index
    %c0_50 = arith.constant 0 : index
    %123 = vector.load %arg5[%c1_48, %c0_49, %c0_50] : memref<2x32x32xf32, #tpu.memory_space<vmem>>, vector<1x32x32xf32>
    %124 = vector.shape_cast %123 : vector<1x32x32xf32> to vector<32x32xf32>
    %c1_51 = arith.constant 1 : index
    %c0_52 = arith.constant 0 : index
    %c0_53 = arith.constant 0 : index
    %125 = vector.load %arg6[%c1_51, %c0_52, %c0_53] : memref<2x32x64xf32, #tpu.memory_space<vmem>>, vector<1x32x64xf32>
    %126 = vector.shape_cast %125 : vector<1x32x64xf32> to vector<32x64xf32>
    %c1_54 = arith.constant 1 : index
    %c0_55 = arith.constant 0 : index
    %c0_56 = arith.constant 0 : index
    %127 = vector.load %arg7[%c1_54, %c0_55, %c0_56] : memref<2x64x32xf32, #tpu.memory_space<vmem>>, vector<1x64x32xf32>
    %128 = vector.shape_cast %127 : vector<1x64x32xf32> to vector<64x32xf32>
    %c1_57 = arith.constant 1 : index
    %c0_58 = arith.constant 0 : index
    %c0_59 = arith.constant 0 : index
    %129 = vector.load %arg8[%c1_57, %c0_58, %c0_59] : memref<2x8x128xf32, #tpu.memory_space<vmem>>, vector<1x8x128xf32>
    %130 = vector.shape_cast %129 : vector<1x8x128xf32> to vector<8x128xf32>
    %131 = vector.extract_strided_slice %130 {offsets = [0, 0], sizes = [1, 96], strides = [1, 1]} : vector<8x128xf32> to vector<1x96xf32>
    %132 = vector.extract_strided_slice %130 {offsets = [1, 0], sizes = [1, 32], strides = [1, 1]} : vector<8x128xf32> to vector<1x32xf32>
    %133 = vector.extract_strided_slice %130 {offsets = [2, 0], sizes = [1, 64], strides = [1, 1]} : vector<8x128xf32> to vector<1x64xf32>
    %134 = vector.extract_strided_slice %130 {offsets = [3, 0], sizes = [1, 32], strides = [1, 1]} : vector<8x128xf32> to vector<1x32xf32>
    %135 = vector.extract_strided_slice %130 {offsets = [4, 0], sizes = [1, 32], strides = [1, 1]} : vector<8x128xf32> to vector<1x32xf32>
    %136 = vector.extract_strided_slice %130 {offsets = [5, 0], sizes = [1, 32], strides = [1, 1]} : vector<8x128xf32> to vector<1x32xf32>
    %137 = vector.extract_strided_slice %130 {offsets = [6, 0], sizes = [1, 32], strides = [1, 1]} : vector<8x128xf32> to vector<1x32xf32>
    %138 = vector.extract_strided_slice %130 {offsets = [7, 0], sizes = [1, 32], strides = [1, 1]} : vector<8x128xf32> to vector<1x32xf32>
    %cst_60 = arith.constant dense<0.000000e+00> : vector<8x96xf32>
    %139 = tpu.matmul %120, %122, %cst_60 {dimension_numbers = #tpu.dot_dimension_numbers<[1], [0], [0], [1], [0, 0, 1, 1], [], []>} : vector<8x32xf32>, vector<32x96xf32>, vector<8x96xf32> -> vector<8x96xf32>
    %140 = vector.broadcast %131 : vector<1x96xf32> to vector<8x96xf32>
    %141 = arith.addf %139, %140 : vector<8x96xf32>
    %142 = vector.extract_strided_slice %141 {offsets = [0, 0], sizes = [8, 8], strides = [1, 1]} : vector<8x96xf32> to vector<8x8xf32>
    %143 = vector.extract_strided_slice %141 {offsets = [0, 32], sizes = [8, 8], strides = [1, 1]} : vector<8x96xf32> to vector<8x8xf32>
    %144 = vector.extract_strided_slice %141 {offsets = [0, 64], sizes = [8, 8], strides = [1, 1]} : vector<8x96xf32> to vector<8x8xf32>
    %cst_61 = arith.constant dense<0.000000e+00> : vector<8x8xf32>
    %145 = tpu.matmul %142, %143, %cst_61 {dimension_numbers = #tpu.dot_dimension_numbers<[1], [1], [0], [0], [0, 0, 1, 0], [], []>} : vector<8x8xf32>, vector<8x8xf32>, vector<8x8xf32> -> vector<8x8xf32>
    %146 = vector.extract_strided_slice %141 {offsets = [0, 8], sizes = [8, 8], strides = [1, 1]} : vector<8x96xf32> to vector<8x8xf32>
    %147 = vector.extract_strided_slice %141 {offsets = [0, 40], sizes = [8, 8], strides = [1, 1]} : vector<8x96xf32> to vector<8x8xf32>
    %148 = vector.extract_strided_slice %141 {offsets = [0, 72], sizes = [8, 8], strides = [1, 1]} : vector<8x96xf32> to vector<8x8xf32>
    %cst_62 = arith.constant dense<0.000000e+00> : vector<8x8xf32>
    %149 = tpu.matmul %146, %147, %cst_62 {dimension_numbers = #tpu.dot_dimension_numbers<[1], [1], [0], [0], [0, 0, 1, 0], [], []>} : vector<8x8xf32>, vector<8x8xf32>, vector<8x8xf32> -> vector<8x8xf32>
    %150 = vector.extract_strided_slice %141 {offsets = [0, 16], sizes = [8, 8], strides = [1, 1]} : vector<8x96xf32> to vector<8x8xf32>
    %151 = vector.extract_strided_slice %141 {offsets = [0, 48], sizes = [8, 8], strides = [1, 1]} : vector<8x96xf32> to vector<8x8xf32>
    %152 = vector.extract_strided_slice %141 {offsets = [0, 80], sizes = [8, 8], strides = [1, 1]} : vector<8x96xf32> to vector<8x8xf32>
    %cst_63 = arith.constant dense<0.000000e+00> : vector<8x8xf32>
    %153 = tpu.matmul %150, %151, %cst_63 {dimension_numbers = #tpu.dot_dimension_numbers<[1], [1], [0], [0], [0, 0, 1, 0], [], []>} : vector<8x8xf32>, vector<8x8xf32>, vector<8x8xf32> -> vector<8x8xf32>
    %154 = vector.extract_strided_slice %141 {offsets = [0, 24], sizes = [8, 8], strides = [1, 1]} : vector<8x96xf32> to vector<8x8xf32>
    %155 = vector.extract_strided_slice %141 {offsets = [0, 56], sizes = [8, 8], strides = [1, 1]} : vector<8x96xf32> to vector<8x8xf32>
    %156 = vector.extract_strided_slice %141 {offsets = [0, 88], sizes = [8, 8], strides = [1, 1]} : vector<8x96xf32> to vector<8x8xf32>
    %cst_64 = arith.constant dense<0.000000e+00> : vector<8x8xf32>
    %157 = tpu.matmul %154, %155, %cst_64 {dimension_numbers = #tpu.dot_dimension_numbers<[1], [1], [0], [0], [0, 0, 1, 0], [], []>} : vector<8x8xf32>, vector<8x8xf32>, vector<8x8xf32> -> vector<8x8xf32>
    %158 = tpu.concatenate %145, %149, %153, %157 in 0 : vector<8x8xf32>, vector<8x8xf32>, vector<8x8xf32>, vector<8x8xf32> -> vector<32x8xf32>
    %cst_65 = arith.constant dense<0xFF800000> : vector<32xf32>
    %159 = vector.multi_reduction <maximumf>, %158, %cst_65 [1] : vector<32x8xf32> to vector<32xf32>
    %160 = vector.shape_cast %159 : vector<32xf32> to vector<32x1xf32>
    %161 = vector.broadcast %160 : vector<32x1xf32> to vector<32x8xf32>
    %162 = arith.subf %158, %161 : vector<32x8xf32>
    %163 = math.exp %162 : vector<32x8xf32>
    %cst_66 = arith.constant dense<0.000000e+00> : vector<32xf32>
    %164 = vector.multi_reduction <add>, %163, %cst_66 [1] : vector<32x8xf32> to vector<32xf32>
    %165 = vector.shape_cast %164 : vector<32xf32> to vector<32x1xf32>
    %166 = tpu.reciprocal %165 : vector<32x1xf32> -> vector<32x1xf32>
    %167 = vector.broadcast %166 : vector<32x1xf32> to vector<32x8xf32>
    %168 = arith.mulf %163, %167 : vector<32x8xf32>
    %169 = vector.extract_strided_slice %168 {offsets = [0, 0], sizes = [8, 8], strides = [1, 1]} : vector<32x8xf32> to vector<8x8xf32>
    %cst_67 = arith.constant dense<0.000000e+00> : vector<8x8xf32>
    %170 = tpu.matmul %169, %144, %cst_67 {dimension_numbers = #tpu.dot_dimension_numbers<[1], [0], [0], [1], [0, 0, 1, 1], [], []>} : vector<8x8xf32>, vector<8x8xf32>, vector<8x8xf32> -> vector<8x8xf32>
    %171 = vector.extract_strided_slice %168 {offsets = [8, 0], sizes = [8, 8], strides = [1, 1]} : vector<32x8xf32> to vector<8x8xf32>
    %cst_68 = arith.constant dense<0.000000e+00> : vector<8x8xf32>
    %172 = tpu.matmul %171, %148, %cst_68 {dimension_numbers = #tpu.dot_dimension_numbers<[1], [0], [0], [1], [0, 0, 1, 1], [], []>} : vector<8x8xf32>, vector<8x8xf32>, vector<8x8xf32> -> vector<8x8xf32>
    %173 = vector.extract_strided_slice %168 {offsets = [16, 0], sizes = [8, 8], strides = [1, 1]} : vector<32x8xf32> to vector<8x8xf32>
    %cst_69 = arith.constant dense<0.000000e+00> : vector<8x8xf32>
    %174 = tpu.matmul %173, %152, %cst_69 {dimension_numbers = #tpu.dot_dimension_numbers<[1], [0], [0], [1], [0, 0, 1, 1], [], []>} : vector<8x8xf32>, vector<8x8xf32>, vector<8x8xf32> -> vector<8x8xf32>
    %175 = vector.extract_strided_slice %168 {offsets = [24, 0], sizes = [8, 8], strides = [1, 1]} : vector<32x8xf32> to vector<8x8xf32>
    %cst_70 = arith.constant dense<0.000000e+00> : vector<8x8xf32>
    %176 = tpu.matmul %175, %156, %cst_70 {dimension_numbers = #tpu.dot_dimension_numbers<[1], [0], [0], [1], [0, 0, 1, 1], [], []>} : vector<8x8xf32>, vector<8x8xf32>, vector<8x8xf32> -> vector<8x8xf32>
    %177 = tpu.concatenate %170, %172, %174, %176 in 1 : vector<8x8xf32>, vector<8x8xf32>, vector<8x8xf32>, vector<8x8xf32> -> vector<8x32xf32>
    %cst_71 = arith.constant dense<0.000000e+00> : vector<8x32xf32>
    %178 = tpu.matmul %177, %124, %cst_71 {dimension_numbers = #tpu.dot_dimension_numbers<[1], [0], [0], [1], [0, 0, 1, 1], [], []>} : vector<8x32xf32>, vector<32x32xf32>, vector<8x32xf32> -> vector<8x32xf32>
    %179 = vector.broadcast %132 : vector<1x32xf32> to vector<8x32xf32>
    %180 = arith.addf %178, %179 : vector<8x32xf32>
    %181 = arith.addf %120, %180 : vector<8x32xf32>
    %cst_72 = arith.constant dense<0.000000e+00> : vector<8xf32>
    %182 = vector.multi_reduction <add>, %181, %cst_72 [1] : vector<8x32xf32> to vector<8xf32>
    %183 = vector.shape_cast %182 : vector<8xf32> to vector<8x1xf32>
    %cst_73 = arith.constant 3.200000e+01 : f32
    %184 = vector.broadcast %cst_73 : f32 to vector<8x1xf32>
    %185 = arith.divf %183, %184 : vector<8x1xf32>
    %186 = vector.broadcast %185 : vector<8x1xf32> to vector<8x32xf32>
    %187 = arith.subf %181, %186 : vector<8x32xf32>
    %188 = arith.mulf %187, %187 : vector<8x32xf32>
    %cst_74 = arith.constant dense<0.000000e+00> : vector<8xf32>
    %189 = vector.multi_reduction <add>, %188, %cst_74 [1] : vector<8x32xf32> to vector<8xf32>
    %190 = vector.shape_cast %189 : vector<8xf32> to vector<8x1xf32>
    %cst_75 = arith.constant 3.200000e+01 : f32
    %191 = vector.broadcast %cst_75 : f32 to vector<8x1xf32>
    %192 = arith.divf %190, %191 : vector<8x1xf32>
    %193 = vector.broadcast %185 : vector<8x1xf32> to vector<8x32xf32>
    %194 = arith.subf %181, %193 : vector<8x32xf32>
    %cst_76 = arith.constant 9.99999974E-6 : f32
    %195 = vector.broadcast %cst_76 : f32 to vector<8x1xf32>
    %196 = arith.addf %192, %195 : vector<8x1xf32>
    %197 = math.rsqrt %196 : vector<8x1xf32>
    %198 = vector.broadcast %197 : vector<8x1xf32> to vector<8x32xf32>
    %199 = arith.mulf %194, %198 : vector<8x32xf32>
    %200 = vector.broadcast %135 : vector<1x32xf32> to vector<8x32xf32>
    %201 = arith.mulf %199, %200 : vector<8x32xf32>
    %202 = vector.broadcast %136 : vector<1x32xf32> to vector<8x32xf32>
    %203 = arith.addf %201, %202 : vector<8x32xf32>
    %cst_77 = arith.constant dense<0.000000e+00> : vector<8x64xf32>
    %204 = tpu.matmul %203, %126, %cst_77 {dimension_numbers = #tpu.dot_dimension_numbers<[1], [0], [0], [1], [0, 0, 1, 1], [], []>} : vector<8x32xf32>, vector<32x64xf32>, vector<8x64xf32> -> vector<8x64xf32>
    %205 = vector.broadcast %133 : vector<1x64xf32> to vector<8x64xf32>
    %206 = arith.addf %204, %205 : vector<8x64xf32>
    %cst_78 = arith.constant 0.000000e+00 : f32
    %207 = vector.broadcast %cst_78 : f32 to vector<8x64xf32>
    %208 = arith.maximumf %206, %207 : vector<8x64xf32>
    %cst_79 = arith.constant dense<0.000000e+00> : vector<8x32xf32>
    %209 = tpu.matmul %208, %128, %cst_79 {dimension_numbers = #tpu.dot_dimension_numbers<[1], [0], [0], [1], [0, 0, 1, 1], [], []>} : vector<8x64xf32>, vector<64x32xf32>, vector<8x32xf32> -> vector<8x32xf32>
    %210 = vector.broadcast %134 : vector<1x32xf32> to vector<8x32xf32>
    %211 = arith.addf %209, %210 : vector<8x32xf32>
    %212 = arith.addf %203, %211 : vector<8x32xf32>
    %cst_80 = arith.constant dense<0.000000e+00> : vector<8xf32>
    %213 = vector.multi_reduction <add>, %212, %cst_80 [1] : vector<8x32xf32> to vector<8xf32>
    %214 = vector.shape_cast %213 : vector<8xf32> to vector<8x1xf32>
    %cst_81 = arith.constant 3.200000e+01 : f32
    %215 = vector.broadcast %cst_81 : f32 to vector<8x1xf32>
    %216 = arith.divf %214, %215 : vector<8x1xf32>
    %217 = vector.broadcast %216 : vector<8x1xf32> to vector<8x32xf32>
    %218 = arith.subf %212, %217 : vector<8x32xf32>
    %219 = arith.mulf %218, %218 : vector<8x32xf32>
    %cst_82 = arith.constant dense<0.000000e+00> : vector<8xf32>
    %220 = vector.multi_reduction <add>, %219, %cst_82 [1] : vector<8x32xf32> to vector<8xf32>
    %221 = vector.shape_cast %220 : vector<8xf32> to vector<8x1xf32>
    %cst_83 = arith.constant 3.200000e+01 : f32
    %222 = vector.broadcast %cst_83 : f32 to vector<8x1xf32>
    %223 = arith.divf %221, %222 : vector<8x1xf32>
    %224 = vector.broadcast %216 : vector<8x1xf32> to vector<8x32xf32>
    %225 = arith.subf %212, %224 : vector<8x32xf32>
    %cst_84 = arith.constant 9.99999974E-6 : f32
    %226 = vector.broadcast %cst_84 : f32 to vector<8x1xf32>
    %227 = arith.addf %223, %226 : vector<8x1xf32>
    %228 = math.rsqrt %227 : vector<8x1xf32>
    %229 = vector.broadcast %228 : vector<8x1xf32> to vector<8x32xf32>
    %230 = arith.mulf %225, %229 : vector<8x32xf32>
    %231 = vector.broadcast %137 : vector<1x32xf32> to vector<8x32xf32>
    %232 = arith.mulf %230, %231 : vector<8x32xf32>
    %233 = vector.broadcast %138 : vector<1x32xf32> to vector<8x32xf32>
    %234 = arith.addf %232, %233 : vector<8x32xf32>
    %c0_85 = arith.constant 0 : index
    %c0_86 = arith.constant 0 : index
    %c0_87 = arith.constant 0 : index
    %235 = vector.load %arg9[%c0_85, %c0_86, %c0_87] : memref<1x8x32xf32, #tpu.memory_space<vmem>>, vector<1x8x32xf32>
    %236 = vector.shape_cast %235 : vector<1x8x32xf32> to vector<8x32xf32>
    %237 = vector.shape_cast %234 : vector<8x32xf32> to vector<1x8x32xf32>
    tpu.vector_store %arg9[%c0_85, %c0_86, %c0_87], %237 {strides = array<i32>} : memref<1x8x32xf32, #tpu.memory_space<vmem>>, vector<1x8x32xf32>,
    return
  }
  func.func @transform_0(%arg0: i32) -> (i32, i32, i32) {
    %c0_i32 = arith.constant 0 : i32
    %c0_i32_0 = arith.constant 0 : i32
    %c0_i32_1 = arith.constant 0 : i32
    return %arg0, %c0_i32, %c0_i32_0 : i32, i32, i32
  }
  func.func @transform_1(%arg0: i32) -> (i32, i32) {
    %c0_i32 = arith.constant 0 : i32
    %c0_i32_0 = arith.constant 0 : i32
    %c0_i32_1 = arith.constant 0 : i32
    return %c0_i32, %c0_i32_0 : i32, i32
  }
  func.func @transform_2(%arg0: i32) -> (i32, i32) {
    %c0_i32 = arith.constant 0 : i32
    %c0_i32_0 = arith.constant 0 : i32
    %c0_i32_1 = arith.constant 0 : i32
    return %c0_i32, %c0_i32_0 : i32, i32
  }
  func.func @transform_3(%arg0: i32) -> (i32, i32, i32) {
    %c0_i32 = arith.constant 0 : i32
    %c0_i32_0 = arith.constant 0 : i32
    %c0_i32_1 = arith.constant 0 : i32
    %c0_i32_2 = arith.constant 0 : i32
    return %c0_i32, %c0_i32_0, %c0_i32_1 : i32, i32, i32
  }
  func.func @transform_4(%arg0: i32) -> (i32, i32, i32) {
    %c0_i32 = arith.constant 0 : i32
    %c0_i32_0 = arith.constant 0 : i32
    %c0_i32_1 = arith.constant 0 : i32
    %c0_i32_2 = arith.constant 0 : i32
    return %c0_i32, %c0_i32_0, %c0_i32_1 : i32, i32, i32
  }
  func.func @transform_5(%arg0: i32) -> (i32, i32, i32) {
    %c0_i32 = arith.constant 0 : i32
    %c0_i32_0 = arith.constant 0 : i32
    %c0_i32_1 = arith.constant 0 : i32
    %c0_i32_2 = arith.constant 0 : i32
    return %c0_i32, %c0_i32_0, %c0_i32_1 : i32, i32, i32
  }
  func.func @transform_6(%arg0: i32) -> (i32, i32, i32) {
    %c0_i32 = arith.constant 0 : i32
    %c0_i32_0 = arith.constant 0 : i32
    %c0_i32_1 = arith.constant 0 : i32
    %c0_i32_2 = arith.constant 0 : i32
    return %c0_i32, %c0_i32_0, %c0_i32_1 : i32, i32, i32
  }
  func.func @transform_7(%arg0: i32) -> (i32, i32, i32) {
    %c0_i32 = arith.constant 0 : i32
    %c0_i32_0 = arith.constant 0 : i32
    %c0_i32_1 = arith.constant 0 : i32
    %c0_i32_2 = arith.constant 0 : i32
    return %c0_i32, %c0_i32_0, %c0_i32_1 : i32, i32, i32
  }
  func.func @transform_8(%arg0: i32) -> (i32, i32, i32) {
    %c0_i32 = arith.constant 0 : i32
    %c0_i32_0 = arith.constant 0 : i32
    %c0_i32_1 = arith.constant 0 : i32
    return %arg0, %c0_i32, %c0_i32_0 : i32, i32, i32
  }
}

</mosaic_0001>

<bundles_post_ra>
// kernel: transformer_encoder_forward.1
= control target key start
LH: loop header
LB: loop body
LE: loop exit
PB: predicated region body
PF: predicated region fallthrough
CT: control target
= control target key end

     0   :  { %s3933_s0 = inlined_call_operand.hbm [shape: f32[2,8,12], index: 0, kind: input, shape index: {}]   ;;  %s3934_s1 = inlined_call_operand.hbm [shape: f32[12,32], index: 1, kind: input, shape index: {}]   ;;  %s3935_s2 = inlined_call_operand.vmem [shape: f32[1,32], index: 2, kind: input, shape index: {}]   ;;  %s3936_s3 = inlined_call_operand.vmem [shape: f32[2,32,96], index: 3, kind: input, shape index: {}]   ;;  %s3937_s4 = inlined_call_operand.vmem [shape: f32[2,32,32], index: 4, kind: input, shape index: {}]   ;;  %s3938_s5 = inlined_call_operand.vmem [shape: f32[2,32,64], index: 5, kind: input, shape index: {}]   ;;  %s3939_s6 = inlined_call_operand.vmem [shape: f32[2,64,32], index: 6, kind: input, shape index: {}]   ;;  %s3940_s7 = inlined_call_operand.hbm [shape: f32[2,8,128], index: 7, kind: input, shape index: {}]   ;;  %s3941_s8 = inlined_call_operand.hbm [shape: f32[2,8,32], index: 8, kind: output, shape index: {}]  }
   0x1   :  { %3954 = sst [smem:[#allocation13_spill]] %s3934_s1 }
   0x2   :  { %3955 = sst [smem:[#allocation14_spill]] %s3940_s7 }
   0x3   :  { %13 = vsyncpa [#allocation3], 0 }
   0x4   :  { %15 = vsyncpa [#allocation3 + $0x1], 0 }
   0x5   :  { %16 = vsyncpa [#allocation6], 0 }
   0x6   :  { %17 = vsyncpa [#allocation4], 0 }
   0x7   :  { %19 = vsyncpa [#allocation4 + $0x1], 0  ;;  %s3344_s27 = smov 0   ;;  %s3346_s28 = smov 0  }
   0x8   :  { %s3348_s29 = smov 0   ;;  %s3350_s30 = smov 0  }
   0x9 LB: > { %s3365_s9 = sadd.s32 4294967295, %s3275_s30   ;;  %s2657_s10 = sadd.s32 4294967294, %s3275_s30   ;;  %s3275_s30 = sphi %s3350_s30, %s3985_s30   ;;  %s3271_s29 = sphi %s3348_s29, %s3984_s29   ;;  %s3267_s28 = sphi %s3346_s28, %s3983_s28   ;;  %s3263_s27 = sphi %s3344_s27, %s3982_s27  }
   0xa   : > { %p45_p0 = scmp.ne.s32.totalorder %s3267_s28, %s3263_s27  ;;  %p3942_p1 = scmp.eq.s32.totalorder %s3365_s9, 0 }
   0xb   : > { %p222_p3 = scmp.eq.s32.totalorder %s2657_s10, 1  ;;  %p2658_p5 = scmp.ge.s32.totalorder %s3275_s30, 1 }
   0xc   : > { %p3374_p4 = por %p3942_p1, %p45_p0  ;;  %p229_p7 = scmp.lt.s32.totalorder %s3275_s30, 3 }
   0xd   : > { %p3379_p6 = por %p222_p3, %p45_p0  ;;  %s3277_s14 = smov [#allocation5]  }
   0xe   : > { %s3956_s11 = scalar_select %p3374_p4, 1, 0 }
   0xf   : > { %s3957_s12 = scalar_select %p3379_p6, 1, 0 }
  0x10   : > { %p3384_p8 = pnand %p2658_p5, %p229_p7  ;;  %s241_s15 = sshll.u32 %s3277_s14, 4  ;;  %s242_s15 = int_to_ptr.vmem [resolvable:$true] %s241_s15 }
  0x11   : > { %s3278_s17 = smov [#allocation7]   ;;  %s3138_s19 = scalar_lea.vmem %s242_s15, 256 }
  0x12   : > { %s3958_s13 = scalar_select %p3384_p8, 1, 0 }
  0x13   : > { %p3014_p9 = pneg %p3384_p8  ;;  %s269_s18 = sshll.u32 %s3278_s17, 4  ;;  %s270_s18 = int_to_ptr.vmem [resolvable:$true] %s269_s18 }
  0x14   : > { %p3139_p13 = scmp.ne.s32.totalorder %s242_s15, %s3138_s19  ;;  %p3146_p5 = scmp.lt.s32.totalorder %s242_s15, %s242_s15 }
  0x15   : > { %p3393_p11 = pnand %p3014_p9, %p3942_p1  ;;  %p3147_p7 = scmp.lt.s32.totalorder %s3138_s19, %s3138_s19 }
  0x17   : > { %p3129_p12 = pneg %p3393_p11  ;;  %p3148_p10 = por %p3147_p7, %p3146_p5 }
  0x19   : > { %p3141_p0 = pnand %p3139_p13, %p3129_p12 }
  0x1b   : > { %p3142_p3 = pneg %p3141_p0 }
  0x1d   : > { %p3149_p9 = pnand %p3148_p10, %p3142_p3 }
  0x1f   : > { %3152 = shalt.err (!%p3149_p9)
}
  0x20   : > { %s3279_s20 = smov 128   ;;  %s3280_s21 = smov 8  }
  0x21   : > { %s3960_s1 = sld [smem:[#allocation13_spill]]  ;;  %s3164_s24 = scalar_lea.vmem %s270_s18, 256 }
  0x22   : > { %p3165_p1 = scmp.ne.s32.totalorder %s270_s18, %s3164_s24  ;;  %p3172_p2 = scmp.lt.s32.totalorder %s270_s18, %s270_s18 }
  0x23   : > { %p3173_p6 = scmp.lt.s32.totalorder %s3164_s24, %s3164_s24 }
  0x24   : > { %p3167_p13 = pnand %p3165_p1, %p3129_p12 }
  0x25   : > { %p3174_p5 = por %p3173_p6, %p3172_p2 }
  0x26   : > { %p3168_p0 = pneg %p3167_p13 }
  0x27   : > { %3017 = dma.hbm_to_vmem [thread:$0]  (!%p3393_p11), %s3960_s1, 256, %s242_s15, [#allocation6], %s3279_s20, %s3279_s20, %s3280_s21  }
  0x28   : > { %p3175_p10 = pnand %p3174_p5, %p3168_p0 }
  0x2a   : > { %3178 = shalt.err (!%p3175_p10)
}
  0x2b   : > { %s3961_s7 = sld [smem:[#allocation14_spill]]  ;;  %s3416_s10 = sadd.s32 1, %s3275_s30  }
  0x2c   : > { %s32_s14 = sadd.s32 1, %s3271_s29  ;;  %s29_s15 = ssub.s32 %s3275_s30, %s3416_s10 }
  0x2d   : > { %p39_p1 = scmp.ne.s32.totalorder %s3271_s29, %s3267_s28  ;;  %p30_p2 = scmp.eq.s32.totalorder %s29_s15, 0 }
  0x2e   : > { %p40_p6 = scmp.eq.s32.totalorder %s3275_s30, 0  ;;  %p3962_p12 = scmp.eq.s32.totalorder %s3365_s9, 1 }
  0x2f   : > { %p3031_p7 = scmp.lt.s32.totalorder %s3275_s30, 2  ;;  %s283_s19 = sand.u32 1, %s3271_s29  }
  0x30   : > { %p3426_p3 = por %p3962_p12, %p39_p1  ;;  %p41_p9 = por %p40_p6, %p39_p1 }
  0x31   : > { %3020 = dma.hbm_to_vmem [thread:$0]  (!%p3393_p11), %s3961_s7, 256, %s270_s18, [#allocation6], %s3279_s20, %s3279_s20, %s3280_s21  }
  0x32   : > { %s3963_s16 = scalar_select %p3426_p3, 1, 0 }
  0x33   : > { %s3432_s17 = scalar_select %p30_p2, %s3271_s29, %s32_s14  }
  0x34   : > { %s2662_s22 = sshll.u32 %s283_s19, 3  ;;  %s2663_s18 = sshll.u32 %s3275_s30, 7 }
  0x35   : > { %3964 = sst [smem:[#allocation12_spill]] %s3432_s17  ;;  %s3439_s23 = scalar_lea.hbm %s3933_s0, %s2663_s18 }
  0x36   : > { %s287_s24 = scalar_lea.vmem [#allocation2], %s2662_s22  ;;  %p3441_p11 = pnand %p3031_p7, %p41_p9 }
  0x37   : > { %s294_s25 = sshll.u32 %s287_s24, 4  ;;  %s284_s14 = scalar_lea.sflag [#allocation3], %s283_s19  ;;  %s295_s25 = int_to_ptr.vmem [resolvable:$true] %s294_s25 }
  0x38   : > { %s3179_s15 = scalar_lea.hbm %s3439_s23, 128  ;;  %p3181_p0 = pneg %p3441_p11 }
  0x39   : > { %p3180_p13 = scmp.ne.s32.totalorder %s3439_s23, %s3179_s15  ;;  %s3184_s21 = scalar_lea.hbm %s3933_s0, 256 }
  0x3a   : > { %p3185_p1 = scmp.lt.s32.totalorder %s3439_s23, %s3933_s0  ;;  %p3186_p2 = scmp.lt.s32.totalorder %s3184_s21, %s3179_s15 }
  0x3b   : > { %p3182_p5 = pnand %p3181_p0, %p3180_p13 }
  0x3c   : > { %p3187_p6 = por %p3186_p2, %p3185_p1 }
  0x3d   : > { %p3183_p10 = pneg %p3182_p5 }
  0x3f   : > { %p3188_p12 = pnand %p3187_p6, %p3183_p10 }
  0x41   : > { %3191 = shalt.err (!%p3188_p12)
}
  0x42   : > { %s3192_s24 = scalar_lea.vmem %s295_s25, 128  ;;  %s3281_s19 = smov [#allocation2]  }
  0x43   : > { %p3193_p7 = scmp.ne.s32.totalorder %s295_s25, %s3192_s24  ;;  %s3197_s7 = sshll.u32 %s3281_s19, 4  ;;  %s3198_s7 = int_to_ptr.vmem [resolvable:$false] %s3197_s7 }
  0x44   : > { %s3199_s17 = scalar_lea.vmem %s3198_s7, 256  ;;  %p3200_p13 = scmp.lt.s32.totalorder %s295_s25, %s3198_s7 }
  0x45   : > { %p3195_p9 = pnand %p3193_p7, %p3181_p0  ;;  %p3201_p5 = scmp.lt.s32.totalorder %s3199_s17, %s3192_s24 }
  0x47   : > { %p3196_p3 = pneg %p3195_p9  ;;  %p3202_p4 = por %p3201_p5, %p3200_p13 }
  0x49   : > { %p3203_p8 = pnand %p3202_p4, %p3196_p3 }
  0x4b   : > { %3206 = shalt.err (!%p3203_p8)
}
  0x4c   : > { %3024 = dma.hbm_to_vmem [thread:$0]  (!%p3441_p11), %s3439_s23, 128, %s295_s25, %s284_s14  }
  0x4d   : > { %p3966_p10 = scmp.ne.s32.totalorder %s3958_s13, 0 }
  0x4e   : > { %s3462_s1 = sand.u32 (!%p3966_p10), 1, %s3267_s28   ;;  %p3967_p4 = scmp.ne.s32.totalorder (!%p3966_p10), %s3956_s11, 0 }
  0x4f   : > { %303 = sbr.rel (%p3966_p10) target bundleno = 4989 (0x137d), region = 52  ;;  %s3946_s15 = sshll.u32 (!%p3966_p10), %s3462_s1, 3 }
  0x50   : > { %s306_s7 = scalar_lea.sflag (!%p3966_p10), [#allocation3], %s3462_s1  ;;  %s309_s17 = scalar_lea.vmem (!%p3966_p10), [#allocation2], %s3946_s15 }
  0x54   : > { %3250 = dma.done.wait (%p3967_p4), %s306_s7, 128  }
  0x55   : > { %3252 = vsyncadd (%p3967_p4), %s306_s7, 4294967168  ;;  %p3968_p8 = scmp.eq.s32.totalorder %s3365_s9, 0 }
  0x57   : > { %3254 = dma.done.wait (%p3968_p8), [#allocation6], 512   ;;  %p3969_p3 = pmov %p3968_p8 }
  0x58   : > { %v3282_v0 = vmov 0.0   ;;  %vm3283_vm0 = vmmov 0   ;;  %vm364_vm1 = vcmask 1043456   ;;  %v352_v1 = vld [vmem:[#allocation5 + $0x8] sm:$0xf]  ;;  %v351_v2 = vld [vmem:[#allocation5] sm:$0xff]  ;;  %v459_v12 = vlaneseq }
  0x59   : > { %3256 = vsyncadd (%p3969_p3), [#allocation6], 4294966784  ;;  %2811 = vmatprep.subr.mxu0 %v3282_v0  ;;  %2815 = vmatprep.mubr.msk.f32.mxu0 %vm3283_vm0, %v3282_v0  ;;  %v350_v3 = vld [vmem:[%s309_s17] sm:$0xff]  ;;  %vm360_vm2 = vcmask 97280   ;;  %v441_v4 = vld [vmem:[%s3936_s3 + $0x18] sm:$0xff]  ;;  %vm463_vm3 = vcmask 261120  }
  0x5a   : > { %2839 = vmatprep.subr.mxu1 %v3282_v0  ;;  %2841 = vmatprep.mubr.msk.f32.mxu1 %vm3283_vm0, %v3282_v0  ;;  %v440_v5 = vld [vmem:[%s3936_s3 + $0x10] sm:$0xff]  ;;  %v439_v6 = vld [vmem:[%s3936_s3 + $0x8] sm:$0xff]  ;;  %v438_v7 = vld [vmem:[%s3936_s3] sm:$0xff]  ;;  %v3511_v13 = vshrl.u32 %v459_v12, 7  ;;  %s3284_s24 = smov 120   ;;  %s3285_s19 = smov 96  }
  0x5b   : > { %2812 = vmatpush3.msk.msra.mxu0 %vm364_vm1, %v352_v1  ;;  %v2669_v8 = vld [vmem:[%s3935_s2] ss:$0 sm:$0xff]  ;;  %s3286_s7 = smov 80   ;;  %s3287_s17 = smov 88   ;;  %vm540_vm4 = vcmask 64512   ;;  %vm1210_vm5 = vcmask 130048  }
  0x5c   : > { %2813 = vmatprep.subr.mxu0 %v3282_v0  ;;  %v461_v14 = vsub.s32 0, %v3511_v13  ;;  %v3514_v15 = vld [vmem:[#allocation7] sm:$0xff]  ;;  %s3288_s11 = smov 112   ;;  %s3289_s13 = smov 72   ;;  %vm1212_vm6 = vcmask 195584   ;;  %vm1398_vm7 = vcmask 523264  }
  0x5d   : > { %2814 = vmatpush3.msra.mxu0 %v351_v2  ;;  %s3290_s23 = smov 104   ;;  %s3953_s25 = smov 56  }
  0x5e   : > { %2816 = vmatmul.mubr.msk.f32.vlgmr.msra.gmra.mxu0 %vm360_vm2, %v350_v3  ;;  %2818 = vmatprep.subr.mxu0 %v3282_v0  ;;  %v462_v16 = vrot.slane %v3514_v15, %v461_v14  ;;  %s3949_s26 = smov 64   ;;  %s3948_s14 = smov 48  }
  0x5f   : > { %2819 = vmatpush3.msra.mxu0 %v441_v4  ;;  %2826 = vmatprep.mubr.msk.f32.mxu0 %vm3283_vm0, %v3282_v0  ;;  %s3947_s18 = smov 40   ;;  %s3952_s15 = smov 8  }
  0x60   : > { %2820 = vmatprep.subr.mxu0 %v3282_v0  ;;  %s2725_s22 = sshll.u32 %s3365_s9, 7  ;;  %s3977_s20 = sshll.u32 %s3462_s1, 3 }
  0x61   : > { %2821 = vmatpush3.msra.mxu0 %v440_v5  ;;  %p3978_p0 = scmp.ne.s32.totalorder %s3963_s16, 0 }
  0x62   : > { %2822 = vmatprep.subr.mxu0 %v3282_v0 }
  0x63   : > { %2823 = vmatpush3.msra.mxu0 %v439_v6 }
  0x64   : > { %2824 = vmatprep.subr.mxu0 %v3282_v0 }
  0x65   : > { %2825 = vmatpush3.msra.mxu0 %v438_v7 }
  0x66   : > { %2829 = vmatprep.subr.mxu0 %v3282_v0 }
 0x11e   : > { %v434_v9 = vpop.f32.mrf.mxu0 }
 0x11f   : > { %v3505_v10 = vadd.f32 %v2669_v8, %v434_v9 }
 0x120   : > { %v2817_v11 = vpop.f32.mrf.mxu0 }
 0x121   : > { %2827 = vmatmul.mubr.msk.f32.vlgmr.msra.gmra.mxu0 %vm463_vm3, %v3505_v10 }
 0x122   : > { %2831 = vmatprep.mubr.msk.f32.mxu0 %vm3283_vm0, %v3282_v0 }
 0x1e1   : > { %v533_v17 = vpop.f32.mrf.mxu0 }
 0x1e2   : > { %v3519_v18 = vadd.f32 %v533_v17, %v462_v16  ;;  %v445_v16 = vld [vmem:[%s3937_s4 + $0x18] sm:$0xff]  ;;  %v444_v17 = vld [vmem:[%s3937_s4 + $0x10] sm:$0xff] }
 0x1e3   : > { %v2828_v19 = vpop.f32.mrf.mxu0 }
 0x1e4   : > { %615 = vrot.lane.b32.xlu1 %v3519_v18, %s3284_s24  ;;  %538 = vrot.lane.b32.xlu0 %v3519_v18, %s3285_s19  ;;  %v442_v19 = vld [vmem:[%s3937_s4] sm:$0xff] }
 0x1e8   : > { %695 = vrot.lane.b32.xlu1 %v3519_v18, %s3286_s7  ;;  %617 = vrot.lane.b32.xlu0 %v3519_v18, %s3287_s17 }
 0x1ec   : > { %693 = vrot.lane.b32.xlu1 %v3519_v18, %s3288_s11  ;;  %773 = vrot.lane.b32.xlu0 %v3519_v18, %s3289_s13 }
 0x1f0   : > { %771 = vrot.lane.b32.xlu0 %v3519_v18, %s3290_s23 }
 0x256   : > { %v616_v20 = vpop.permute.xlu1 %615  ;;  %v539_v21 = vpop.permute.xlu0 %538 }
 0x257   : > { %2830 = vmatpush3.xpose.msk.msra.mxu0 %vm540_vm4, %v539_v21 }
 0x258   : > { %2834 = vmatprep.subr.mxu0 %v3282_v0 }
 0x25a   : > { %v696_v22 = vpop.permute.xlu1 %695  ;;  %2832 = vmatmul.mubr.msk.f32.vlgmr.msra.gmra.mxu0 %vm540_vm4, %v3519_v18  ;;  %v618_v23 = vpop.permute.xlu0 %617 }
 0x25b   : > { %2835 = vmatpush3.xpose.msk.msra.mxu0 %vm540_vm4, %v618_v23  ;;  %2840 = vmatpush3.xpose.msk.msra.mxu1 %vm540_vm4, %v696_v22 }
 0x25c   : > { %2836 = vmatprep.mubr.msk.f32.mxu0 %vm3283_vm0, %v3282_v0  ;;  %2844 = vmatprep.subr.mxu0 %v3282_v0 }
 0x25d   : > { %2849 = vmatprep.subr.mxu1 %v3282_v0 }
 0x25e   : > { %v694_v24 = vpop.permute.xlu1 %693  ;;  %2837 = vmatmul.mubr.msk.f32.vlgmr.msra.gmra.mxu0 %vm540_vm4, %v616_v20  ;;  %v774_v25 = vpop.permute.xlu0 %773 }
 0x25f   : > { %2842 = vmatmul.mubr.msk.f32.vlgmr.msra.gmra.mxu1 %vm540_vm4, %v694_v24  ;;  %2845 = vmatpush3.xpose.msk.msra.mxu0 %vm540_vm4, %v774_v25 }
 0x260   : > { %2846 = vmatprep.mubr.msk.f32.mxu0 %vm3283_vm0, %v3282_v0  ;;  %2854 = vmatprep.subr.mxu0 %v3282_v0 }
 0x261   : > { %2851 = vmatprep.mubr.msk.f32.mxu1 %vm3283_vm0, %v3282_v0 }
 0x262   : > { %v772_v26 = vpop.permute.xlu0 %771 }
 0x263   : > { %2847 = vmatmul.mubr.msk.f32.vlgmr.msra.gmra.mxu0 %vm540_vm4, %v772_v26 }
 0x264   : > { %2856 = vmatprep.mubr.msk.f32.mxu0 %vm3283_vm0, %v3282_v0 }
 0x31a   : > { %v611_v27 = vpop.f32.mrf.mxu0 }
 0x31b   : > { %v849_v28 = vsel %vm540_vm4, %v611_v27, -inf }
 0x31c   : > { %850 = vmax.xlane.f32.xlu1 %v849_v28  ;;  %v2833_v29 = vpop.f32.mrf.mxu0 }
 0x31e   : > { %v689_v30 = vpop.f32.mrf.mxu0 }
 0x31f   : > { %v767_v31 = vpop.f32.mrf.mxu1  ;;  %v852_v32 = vsel %vm540_vm4, %v689_v30, -inf }
 0x320   : > { %853 = vmax.xlane.f32.xlu0 %v852_v32  ;;  %v2838_v33 = vpop.f32.mrf.mxu0  ;;  %v855_v36 = vsel %vm540_vm4, %v767_v31, -inf }
 0x321   : > { %v2843_v34 = vpop.f32.mrf.mxu1 }
 0x322   : > { %v1216_v34 = vsub.s32 1, %v3511_v13 }
 0x323   : > { %v845_v35 = vpop.f32.mrf.mxu0 }
 0x324   : > { %856 = vmax.xlane.f32.xlu0 %v855_v36  ;;  %v858_v37 = vsel %vm540_vm4, %v845_v35, -inf }
 0x325   : > { %859 = vmax.xlane.f32.xlu1 %v858_v37  ;;  %v2848_v38 = vpop.f32.mrf.mxu0 }
 0x336   : > { %969 = vrot.lane.b32.xlu1 %v3519_v18, %s3953_s25  ;;  %s3974_s25 = smov 8  }
 0x33a   : > { %893 = vrot.lane.b32.xlu0 %v3519_v18, %s3949_s26 }
 0x3a5   : > { %v851_v39 = vpop.xlane.xlu1 %850 }
 0x3a6   : > { %v861_v40 = vsub.f32 %v611_v27, %v851_v39 }
 0x3a8   : > { %v865_v41 = vmul.f32 1.442695, %v861_v40 }
 0x3a9   : > { %v854_v42 = vpop.xlane.xlu0 %853 }
 0x3aa   : > { %3087 = vpow2.f32 %v865_v41  ;;  %v862_v43 = vsub.f32 %v689_v30, %v854_v42 }
 0x3ac   : > { %v867_v44 = vmul.f32 1.442695, %v862_v43 }
 0x3ad   : > { %v857_v45 = vpop.xlane.xlu0 %856 }
 0x3ae   : > { %3089 = vpow2.f32 %v867_v44  ;;  %v863_v46 = vsub.f32 %v767_v31, %v857_v45  ;;  %v860_v47 = vpop.xlane.xlu1 %859 }
 0x3af   : > { %v864_v48 = vsub.f32 %v845_v35, %v860_v47  ;;  %v1217_v35 = vrot.slane %v3514_v15, %v1216_v34  ;;  %v448_v47 = vld [vmem:[%s3938_s5 + $0x10] sm:$0xff] }
 0x3b0   : > { %v869_v49 = vmul.f32 1.442695, %v863_v46  ;;  %v449_v46 = vld [vmem:[%s3938_s5 + $0x18] sm:$0xff] }
 0x3b1   : > { %v871_v50 = vmul.f32 1.442695, %v864_v48  ;;  %v894_v51 = vpop.permute.xlu0 %893  ;;  %v446_v48 = vld [vmem:[%s3938_s5] sm:$0xff] }
 0x3b2   : > { %3091 = vpow2.f32 %v869_v49  ;;  %2850 = vmatpush3.msra.mxu1 %v894_v51  ;;  %v970_v52 = vpop.permute.xlu1 %969  ;;  %v457_v49 = vld [vmem:[%s3939_s6 + $0x38] sm:$0xff]  ;;  %v455_v51 = vld [vmem:[%s3939_s6 + $0x28] sm:$0xff] }
 0x3b3   : > { %3093 = vpow2.f32 %v871_v50  ;;  %2855 = vmatpush3.msra.mxu0 %v970_v52  ;;  %2859 = vmatprep.subr.mxu1 %v3282_v0  ;;  %v456_v50 = vld [vmem:[%s3939_s6 + $0x30] sm:$0xff]  ;;  %v454_v52 = vld [vmem:[%s3939_s6 + $0x20] sm:$0xff] }
 0x3b4   : > { %2864 = vmatprep.subr.mxu0 %v3282_v0 }
 0x3b7   : > { %v3088_v53 = vpop.eup %3087 }
 0x3b8   : > { %v873_v54 = vsel %vm540_vm4, %v3088_v53, 0.0 }
 0x3b9   : > { %874 = vadd.xlane.f32.xlu0 %v873_v54 }
 0x3bb   : > { %v3090_v55 = vpop.eup %3089 }
 0x3bc   : > { %v876_v56 = vsel %vm540_vm4, %v3090_v55, 0.0 }
 0x3bd   : > { %877 = vadd.xlane.f32.xlu1 %v876_v56 }
 0x3bf   : > { %v3092_v57 = vpop.eup %3091 }
 0x3c0   : > { %v3094_v58 = vpop.eup %3093  ;;  %v879_v59 = vsel %vm540_vm4, %v3092_v57, 0.0 }
 0x3c1   : > { %880 = vadd.xlane.f32.xlu0 %v879_v59  ;;  %v882_v60 = vsel %vm540_vm4, %v3094_v58, 0.0 }
 0x3c2   : > { %883 = vadd.xlane.f32.xlu1 %v882_v60 }
 0x3d3   : > { %1045 = vrot.lane.b32.xlu1 %v3519_v18, %s3948_s14  ;;  %s3950_s14 = smov 16  }
 0x3d7   : > { %1121 = vrot.lane.b32.xlu0 %v3519_v18, %s3947_s18  ;;  %v443_v18 = vld [vmem:[%s3937_s4 + $0x8] sm:$0xff]  ;;  %s3951_s18 = smov 24  }
 0x442   : > { %v875_v61 = vpop.xlane.xlu0 %874 }
 0x443   : > { %3095 = vrcp.f32 %v875_v61 }
 0x446   : > { %v878_v62 = vpop.xlane.xlu1 %877 }
 0x447   : > { %3097 = vrcp.f32 %v878_v62 }
 0x44a   : > { %v881_v63 = vpop.xlane.xlu0 %880 }
 0x44b   : > { %3099 = vrcp.f32 %v881_v63  ;;  %v884_v1 = vpop.xlane.xlu1 %883 }
 0x44c   : > { %3101 = vrcp.f32 %v884_v1 }
 0x44e   : > { %v1122_v7 = vpop.permute.xlu0 %1121 }
 0x44f   : > { %v1046_v4 = vpop.permute.xlu1 %1045 }
 0x450   : > { %v3096_v2 = vpop.eup %3095 }
 0x451   : > { %v889_v3 = vmul.f32 %v3096_v2, %v3088_v53  ;;  %v453_v53 = vld [vmem:[%s3939_s6 + $0x18] sm:$0xff]  ;;  %v452_v2 = vld [vmem:[%s3939_s6 + $0x10] sm:$0xff] }
 0x453   : > { %2852 = vmatmul.mubr.msk.f32.vlgmr.msra.gmra.mxu1 %vm540_vm4, %v889_v3  ;;  %v451_v3 = vld [vmem:[%s3939_s6 + $0x8] sm:$0xff] }
 0x454   : > { %v3098_v5 = vpop.eup %3097  ;;  %2860 = vmatpush3.msra.mxu1 %v1046_v4  ;;  %2861 = vmatprep.mubr.msk.f32.mxu1 %vm3283_vm0, %v3282_v0  ;;  %v450_v4 = vld [vmem:[%s3939_s6] sm:$0xff] }
 0x455   : > { %v890_v6 = vmul.f32 %v3098_v5, %v3090_v55  ;;  %2869 = vmatprep.subr.mxu1 %v3282_v0  ;;  %v1318_v5 = vsub.s32 2, %v3511_v13 }
 0x457   : > { %2857 = vmatmul.mubr.msk.f32.vlgmr.msra.gmra.mxu0 %vm540_vm4, %v890_v6  ;;  %v1319_v6 = vrot.slane %v3514_v15, %v1318_v5 }
 0x458   : > { %v3100_v8 = vpop.eup %3099  ;;  %2865 = vmatpush3.msra.mxu0 %v1122_v7  ;;  %2866 = vmatprep.mubr.msk.f32.mxu0 %vm3283_vm0, %v3282_v0 }
 0x459   : > { %v3102_v9 = vpop.eup %3101  ;;  %v891_v11 = vmul.f32 %v3100_v8, %v3092_v57  ;;  %2880 = vmatprep.subr.mxu0 %v3282_v0  ;;  %v1308_v57 = vsub.s32 4, %v3511_v13 }
 0x45a   : > { %v892_v12 = vmul.f32 %v3102_v9, %v3094_v58  ;;  %v1313_v58 = vsub.s32 5, %v3511_v13 }
 0x45b   : > { %2862 = vmatmul.mubr.msk.f32.vlgmr.msra.gmra.mxu1 %vm540_vm4, %v891_v11  ;;  %v1309_v59 = vrot.slane %v3514_v15, %v1308_v57 }
 0x45c   : > { %2867 = vmatmul.mubr.msk.f32.vlgmr.msra.gmra.mxu0 %vm540_vm4, %v892_v12  ;;  %2877 = vmatprep.mubr.msk.f32.mxu1 %vm3283_vm0, %v3282_v0  ;;  %v1314_v62 = vrot.slane %v3514_v15, %v1313_v58  ;;  %v1396_v12 = vsub.s32 3, %v3511_v13 }
 0x45d   : > { %2888 = vmatprep.mubr.msk.f32.mxu0 %vm3283_vm0, %v3282_v0  ;;  %2870 = vmatpush3.msra.mxu1 %v445_v16 }
 0x45e   : > { %2871 = vmatprep.subr.mxu1 %v3282_v0  ;;  %2881 = vmatpush3.msra.mxu0 %v449_v46  ;;  %v1397_v16 = vrot.slane %v3514_v15, %v1396_v12 }
 0x45f   : > { %2872 = vmatpush3.msra.mxu1 %v444_v17  ;;  %2882 = vmatprep.subr.mxu0 %v3282_v0 }
 0x460   : > { %2873 = vmatprep.subr.mxu1 %v3282_v0  ;;  %2883 = vmatpush3.msra.mxu0 %v448_v47 }
 0x461   : > { %2874 = vmatpush3.msra.mxu1 %v443_v18  ;;  %2884 = vmatprep.subr.mxu0 %v3282_v0 }
 0x462   : > { %2875 = vmatprep.subr.mxu1 %v3282_v0 }
 0x463   : > { %2876 = vmatpush3.msra.mxu1 %v442_v19 }
 0x464   : > { %2891 = vmatprep.subr.mxu1 %v3282_v0 }
 0x513   : > { %v965_v20 = vpop.f32.mrf.mxu1 }
 0x515   : > { %v2853_v21 = vpop.f32.mrf.mxu1 }
 0x517   : > { %v1041_v22 = vpop.f32.mrf.mxu0 }
 0x518   : > { %1198 = vrot.lane.b32.xlu1 %v1041_v22, %s3952_s15  ;;  %s3975_s15 = smov 24  }
 0x519   : > { %v2858_v23 = vpop.f32.mrf.mxu0 }
 0x51b   : > { %v1117_v24 = vpop.f32.mrf.mxu1 }
 0x51c   : > { %1202 = vrot.lane.b32.xlu0 %v1117_v24, %s3950_s14  ;;  %v1193_v25 = vpop.f32.mrf.mxu0  ;;  %s349_s14 = scalar_lea.vmem [#allocation8], %s3977_s20 }
 0x51d   : > { %v2863_v26 = vpop.f32.mrf.mxu1  ;;  %1206 = vrot.lane.b32.xlu1 %v1193_v25, %s3951_s18  ;;  %s3976_s18 = smov 16  }
 0x51e   : > { %v2868_v27 = vpop.f32.mrf.mxu0 }
 0x51f   : > { %v2691_v27 = vld [vmem:[%s3936_s3 + $0x38] sm:$0xff] }
 0x58a   : > { %v1199_v28 = vpop.permute.xlu1 %1198 }
 0x58b   : > { %v1209_v29 = vsel %vm540_vm4, %v965_v20, %v1199_v28  ;;  %v2690_v28 = vld [vmem:[%s3936_s3 + $0x30] sm:$0xff] }
 0x58e   : > { %v1203_v30 = vpop.permute.xlu0 %1202 }
 0x58f   : > { %v1211_v31 = vsel %vm1210_vm5, %v1209_v29, %v1203_v30  ;;  %v1207_v32 = vpop.permute.xlu1 %1206  ;;  %v2689_v29 = vld [vmem:[%s3936_s3 + $0x28] sm:$0xff]  ;;  %v2688_v30 = vld [vmem:[%s3936_s3 + $0x20] sm:$0xff] }
 0x590   : > { %v1213_v33 = vsel %vm1212_vm6, %v1211_v31, %v1207_v32 }
 0x591   : > { %2878 = vmatmul.mubr.msk.f32.vlgmr.msra.gmra.mxu1 %vm463_vm3, %v1213_v33 }
 0x592   : > { %2907 = vmatprep.mubr.msk.f32.mxu1 %vm3283_vm0, %v3282_v0  ;;  %2892 = vmatpush3.msra.mxu1 %v457_v49 }
 0x593   : > { %2893 = vmatprep.subr.mxu1 %v3282_v0 }
 0x594   : > { %2894 = vmatpush3.msra.mxu1 %v456_v50 }
 0x595   : > { %2895 = vmatprep.subr.mxu1 %v3282_v0 }
 0x596   : > { %2896 = vmatpush3.msra.mxu1 %v455_v51 }
 0x597   : > { %2897 = vmatprep.subr.mxu1 %v3282_v0 }
 0x598   : > { %2898 = vmatpush3.msra.mxu1 %v454_v52 }
 0x599   : > { %2899 = vmatprep.subr.mxu1 %v3282_v0 }
 0x59a   : > { %2900 = vmatpush3.msra.mxu1 %v453_v53 }
 0x59b   : > { %2901 = vmatprep.subr.mxu1 %v3282_v0 }
 0x59c   : > { %2902 = vmatpush3.msra.mxu1 %v452_v2 }
 0x59d   : > { %2903 = vmatprep.subr.mxu1 %v3282_v0 }
 0x59e   : > { %2904 = vmatpush3.msra.mxu1 %v451_v3 }
 0x59f   : > { %2905 = vmatprep.subr.mxu1 %v3282_v0 }
 0x5a0   : > { %2906 = vmatpush3.msra.mxu1 %v450_v4 }
 0x5a1   : > { %2931 = vmatprep.subr.mxu1 %v3282_v0 }
 0x651   : > { %v1287_v36 = vpop.f32.mrf.mxu1 }
 0x652   : > { %v1288_v37 = vadd.f32 %v1287_v36, %v1217_v35  ;;  %v1488_v35 = vsub.s32 6, %v3511_v13  ;;  %v1493_v36 = vsub.s32 7, %v3511_v13 }
 0x653   : > { %v2879_v38 = vpop.f32.mrf.mxu1 }
 0x654   : > { %v1291_v39 = vadd.f32 %v1288_v37, %v3505_v10  ;;  %v447_v10 = vld [vmem:[%s3938_s5 + $0x8] sm:$0xff]  ;;  %v1489_v37 = vrot.slane %v3514_v15, %v1488_v35 }
 0x655   : > { %2885 = vmatpush3.msra.mxu0 %v447_v10 }
 0x656   : > { %v1292_v40 = vsel %vm463_vm3, %v1291_v39, 0.0  ;;  %2886 = vmatprep.subr.mxu0 %v3282_v0 }
 0x657   : > { %1293 = vadd.xlane.f32.xlu0 %v1292_v40  ;;  %2887 = vmatpush3.msra.mxu0 %v446_v48  ;;  %v1494_v40 = vrot.slane %v3514_v15, %v1493_v36 }
 0x658   : > { %2910 = vmatprep.subr.mxu0 %v3282_v0 }
 0x6e0   : > { %v1294_v41 = vpop.xlane.xlu0 %1293 }
 0x6e1   : > { %v1296_v42 = vmul.f32 0.03125, %v1294_v41 }
 0x6e3   : > { %v1297_v43 = vsub.f32 %v1291_v39, %v1296_v42 }
 0x6e5   : > { %v1298_v44 = vmul.f32 %v1297_v43, %v1297_v43 }
 0x6e7   : > { %v1299_v45 = vsel %vm463_vm3, %v1298_v44, 0.0 }
 0x6e8   : > { %1300 = vadd.xlane.f32.xlu1 %v1299_v45 }
 0x771   : > { %v1301_v54 = vpop.xlane.xlu1 %1300 }
 0x772   : > { %v1302_v55 = vmul.f32 0.03125, %v1301_v54 }
 0x774   : > { %v1303_v56 = vadd.f32 1e-05, %v1302_v55 }
 0x776   : > { %3103 = vrsqrt.f32 %v1303_v56 }
 0x783   : > { %v3104_v60 = vpop.eup %3103 }
 0x784   : > { %v1305_v61 = vmul.f32 %v3104_v60, %v1297_v43  ;;  %v3722_v43 = vld [vmem:[#allocation7 + $0x8] sm:$0xff] }
 0x785   : > { %v1525_v44 = vrot.slane %v3722_v43, %v461_v14 }
 0x786   : > { %v1310_v63 = vmul.f32 %v1309_v59, %v1305_v61 }
 0x788   : > { %v1315_v1 = vadd.f32 %v1314_v62, %v1310_v63 }
 0x78a   : > { %2889 = vmatmul.mubr.msk.f32.vlgmr.msra.gmra.mxu0 %vm463_vm3, %v1315_v1 }
 0x78b   : > { %2918 = vmatprep.mubr.msk.f32.mxu0 %vm3283_vm0, %v3282_v0  ;;  %2911 = vmatpush3.msra.mxu0 %v2691_v27 }
 0x78c   : > { %2912 = vmatprep.subr.mxu0 %v3282_v0 }
 0x78d   : > { %2913 = vmatpush3.msra.mxu0 %v2690_v28 }
 0x78e   : > { %2914 = vmatprep.subr.mxu0 %v3282_v0 }
 0x78f   : > { %2915 = vmatpush3.msra.mxu0 %v2689_v29 }
 0x790   : > { %2916 = vmatprep.subr.mxu0 %v3282_v0 }
 0x791   : > { %2917 = vmatpush3.msra.mxu0 %v2688_v30 }
 0x792   : > { %2921 = vmatprep.subr.mxu0 %v3282_v0 }
 0x84a   : > { %v1389_v7 = vpop.f32.mrf.mxu0 }
 0x84b   : > { %v1390_v8 = vadd.f32 %v1389_v7, %v1319_v6 }
 0x84c   : > { %v2890_v9 = vpop.f32.mrf.mxu0 }
 0x84d   : > { %v1393_v11 = vmax.f32 %v1390_v8, 0.0 }
 0x84f   : > { %2908 = vmatmul.mubr.msk.f32.vlgmr.msra.gmra.mxu1 %vm1398_vm7, %v1393_v11 }
 0x850   : > { %2933 = vmatprep.mubr.msk.f32.mxu1 %vm3283_vm0, %v3282_v0 }
 0x90f   : > { %v1468_v17 = vpop.f32.mrf.mxu1 }
 0x910   : > { %v1469_v18 = vadd.f32 %v1468_v17, %v1397_v16 }
 0x911   : > { %v2909_v19 = vpop.f32.mrf.mxu1 }
 0x912   : > { %v1472_v20 = vadd.f32 %v1469_v18, %v1315_v1 }
 0x914   : > { %v1473_v21 = vsel %vm463_vm3, %v1472_v20, 0.0 }
 0x915   : > { %1474 = vadd.xlane.f32.xlu0 %v1473_v21 }
 0x99e   : > { %v1475_v22 = vpop.xlane.xlu0 %1474 }
 0x99f   : > { %v1476_v23 = vmul.f32 0.03125, %v1475_v22 }
 0x9a1   : > { %v1477_v24 = vsub.f32 %v1472_v20, %v1476_v23 }
 0x9a3   : > { %v1478_v25 = vmul.f32 %v1477_v24, %v1477_v24 }
 0x9a5   : > { %v1479_v26 = vsel %vm463_vm3, %v1478_v25, 0.0 }
 0x9a6   : > { %1480 = vadd.xlane.f32.xlu0 %v1479_v26 }
 0xa2f   : > { %v1481_v31 = vpop.xlane.xlu0 %1480 }
 0xa30   : > { %v1482_v32 = vmul.f32 0.03125, %v1481_v31 }
 0xa32   : > { %v1483_v33 = vadd.f32 1e-05, %v1482_v32 }
 0xa34   : > { %3105 = vrsqrt.f32 %v1483_v33 }
 0xa41   : > { %v3106_v38 = vpop.eup %3105 }
 0xa42   : > { %v1485_v39 = vmul.f32 %v3106_v38, %v1477_v24 }
 0xa44   : > { %v1490_v41 = vmul.f32 %v1489_v37, %v1485_v39 }
 0xa46   : > { %v3716_v42 = vadd.f32 %v1494_v40, %v1490_v41 }
 0xa48   : > { %2919 = vmatmul.mubr.msk.f32.vlgmr.msra.gmra.mxu0 %vm463_vm3, %v3716_v42 }
 0xa49   : > { %2923 = vmatprep.mubr.msk.f32.mxu0 %vm3283_vm0, %v3282_v0 }
 0xb08   : > { %v1595_v45 = vpop.f32.mrf.mxu0 }
 0xb09   : > { %v3727_v46 = vadd.f32 %v1595_v45, %v1525_v44 }
 0xb0a   : > { %v2920_v47 = vpop.f32.mrf.mxu0 }
 0xb0b   : > { %1678 = vrot.lane.b32.xlu0 %v3727_v46, %s3287_s17  ;;  %1600 = vrot.lane.b32.xlu1 %v3727_v46, %s3285_s19  ;;  %s3971_s19 = smov 64   ;;  %s3973_s17 = smov 40  }
 0xb0f   : > { %1834 = vrot.lane.b32.xlu0 %v3727_v46, %s3289_s13  ;;  %1676 = vrot.lane.b32.xlu1 %v3727_v46, %s3284_s24  ;;  %s3970_s24 = smov 56  }
 0xb13   : > { %1832 = vrot.lane.b32.xlu0 %v3727_v46, %s3290_s23  ;;  %1756 = vrot.lane.b32.xlu1 %v3727_v46, %s3286_s7  ;;  %s3972_s7 = smov 48  }
 0xb17   : > { %1754 = vrot.lane.b32.xlu1 %v3727_v46, %s3288_s11 }
 0xb7d   : > { %v1679_v14 = vpop.permute.xlu0 %1678  ;;  %v1601_v15 = vpop.permute.xlu1 %1600 }
 0xb7e   : > { %2922 = vmatpush3.xpose.msk.msra.mxu0 %vm540_vm4, %v1601_v15 }
 0xb7f   : > { %2926 = vmatprep.subr.mxu0 %v3282_v0 }
 0xb81   : > { %2924 = vmatmul.mubr.msk.f32.vlgmr.msra.gmra.mxu0 %vm540_vm4, %v3727_v46  ;;  %v1677_v10 = vpop.permute.xlu1 %1676  ;;  %v1835_v48 = vpop.permute.xlu0 %1834 }
 0xb82   : > { %2927 = vmatpush3.xpose.msk.msra.mxu0 %vm540_vm4, %v1679_v14  ;;  %2928 = vmatprep.mubr.msk.f32.mxu0 %vm3283_vm0, %v3282_v0 }
 0xb83   : > { %2936 = vmatprep.subr.mxu0 %v3282_v0 }
 0xb85   : > { %2929 = vmatmul.mubr.msk.f32.vlgmr.msra.gmra.mxu0 %vm540_vm4, %v1677_v10  ;;  %v1757_v49 = vpop.permute.xlu1 %1756  ;;  %v1833_v50 = vpop.permute.xlu0 %1832  ;;  %v2695_v10 = vld [vmem:[%s3937_s4 + $0x38] sm:$0xff] }
 0xb86   : > { %2932 = vmatpush3.xpose.msk.msra.mxu1 %vm540_vm4, %v1757_v49  ;;  %2937 = vmatpush3.xpose.msk.msra.mxu0 %vm540_vm4, %v1835_v48  ;;  %v2694_v48 = vld [vmem:[%s3937_s4 + $0x30] sm:$0xff]  ;;  %v2693_v49 = vld [vmem:[%s3937_s4 + $0x28] sm:$0xff] }
 0xb87   : > { %2938 = vmatprep.mubr.msk.f32.mxu0 %vm3283_vm0, %v3282_v0  ;;  %2946 = vmatprep.subr.mxu0 %v3282_v0 }
 0xb88   : > { %2941 = vmatprep.subr.mxu1 %v3282_v0 }
 0xb89   : > { %2939 = vmatmul.mubr.msk.f32.vlgmr.msra.gmra.mxu0 %vm540_vm4, %v1833_v50  ;;  %v1755_v51 = vpop.permute.xlu1 %1754  ;;  %v2692_v50 = vld [vmem:[%s3937_s4 + $0x20] sm:$0xff] }
 0xb8a   : > { %2934 = vmatmul.mubr.msk.f32.vlgmr.msra.gmra.mxu1 %vm540_vm4, %v1755_v51  ;;  %2948 = vmatprep.mubr.msk.f32.mxu0 %vm3283_vm0, %v3282_v0 }
 0xb8b   : > { %2943 = vmatprep.mubr.msk.f32.mxu1 %vm3283_vm0, %v3282_v0 }
 0xc41   : > { %v1672_v52 = vpop.f32.mrf.mxu0 }
 0xc42   : > { %v1910_v53 = vsel %vm540_vm4, %v1672_v52, -inf }
 0xc43   : > { %1911 = vmax.xlane.f32.xlu1 %v1910_v53  ;;  %v2925_v54 = vpop.f32.mrf.mxu0 }
 0xc45   : > { %v1750_v55 = vpop.f32.mrf.mxu0 }
 0xc46   : > { %v1913_v56 = vsel %vm540_vm4, %v1750_v55, -inf }
 0xc47   : > { %1914 = vmax.xlane.f32.xlu0 %v1913_v56  ;;  %v2930_v59 = vpop.f32.mrf.mxu0 }
 0xc49   : > { %v1906_v60 = vpop.f32.mrf.mxu0 }
 0xc4a   : > { %v1828_v61 = vpop.f32.mrf.mxu1  ;;  %v1919_v62 = vsel %vm540_vm4, %v1906_v60, -inf }
 0xc4b   : > { %1920 = vmax.xlane.f32.xlu1 %v1919_v62  ;;  %v2940_v63 = vpop.f32.mrf.mxu0  ;;  %v1916_v1 = vsel %vm540_vm4, %v1828_v61, -inf }
 0xc4c   : > { %v2935_v2 = vpop.f32.mrf.mxu1  ;;  %1917 = vmax.xlane.f32.xlu0 %v1916_v1 }
 0xc5c   : > { %2030 = vrot.lane.b32.xlu1 %v3727_v46, %s3970_s24  ;;  %s2566_s24 = scalar_lea.hbm %s3941_s8, %s2725_s22 }
 0xc62   : > { %1954 = vrot.lane.b32.xlu0 %v3727_v46, %s3971_s19  ;;  %s2555_s19 = scalar_lea.sflag [#allocation4], %s3462_s1 }
 0xccc   : > { %v1912_v3 = vpop.xlane.xlu1 %1911 }
 0xccd   : > { %v1922_v4 = vsub.f32 %v1672_v52, %v1912_v3 }
 0xccf   : > { %v1926_v6 = vmul.f32 1.442695, %v1922_v4  ;;  %v2276_v4 = vrot.slane %v3722_v43, %v1216_v34  ;;  %v2698_v34 = vld [vmem:[%s3938_s5 + $0x30] sm:$0xff] }
 0xcd0   : > { %v1915_v7 = vpop.xlane.xlu0 %1914 }
 0xcd1   : > { %3107 = vpow2.f32 %v1926_v6  ;;  %v1923_v8 = vsub.f32 %v1750_v55, %v1915_v7 }
 0xcd3   : > { %v1928_v9 = vmul.f32 1.442695, %v1923_v8 }
 0xcd4   : > { %v1921_v11 = vpop.xlane.xlu1 %1920 }
 0xcd5   : > { %3109 = vpow2.f32 %v1928_v9  ;;  %v1925_v16 = vsub.f32 %v1906_v60, %v1921_v11  ;;  %v1918_v17 = vpop.xlane.xlu0 %1917 }
 0xcd6   : > { %v1924_v18 = vsub.f32 %v1828_v61, %v1918_v17 }
 0xcd7   : > { %v1932_v19 = vmul.f32 1.442695, %v1925_v16 }
 0xcd8   : > { %v1930_v20 = vmul.f32 1.442695, %v1924_v18  ;;  %v2031_v21 = vpop.permute.xlu1 %2030 }
 0xcd9   : > { %3111 = vpow2.f32 %v1932_v19  ;;  %v1955_v22 = vpop.permute.xlu0 %1954  ;;  %2947 = vmatpush3.msra.mxu0 %v2031_v21  ;;  %v2699_v21 = vld [vmem:[%s3938_s5 + $0x38] sm:$0xff] }
 0xcda   : > { %3113 = vpow2.f32 %v1930_v20  ;;  %2942 = vmatpush3.msra.mxu1 %v1955_v22  ;;  %2956 = vmatprep.subr.mxu0 %v3282_v0  ;;  %v2696_v22 = vld [vmem:[%s3938_s5 + $0x20] sm:$0xff] }
 0xcdb   : > { %2951 = vmatprep.subr.mxu1 %v3282_v0 }
 0xcde   : > { %v3108_v23 = vpop.eup %3107 }
 0xcdf   : > { %v1934_v24 = vsel %vm540_vm4, %v3108_v23, 0.0 }
 0xce0   : > { %1935 = vadd.xlane.f32.xlu0 %v1934_v24  ;;  %v2706_v24 = vld [vmem:[%s3939_s6 + $0x70] sm:$0xff] }
 0xce2   : > { %v3110_v25 = vpop.eup %3109 }
 0xce3   : > { %v1937_v26 = vsel %vm540_vm4, %v3110_v25, 0.0 }
 0xce4   : > { %1938 = vadd.xlane.f32.xlu1 %v1937_v26  ;;  %v2704_v26 = vld [vmem:[%s3939_s6 + $0x60] sm:$0xff] }
 0xce6   : > { %v3112_v27 = vpop.eup %3111 }
 0xce7   : > { %v3114_v28 = vpop.eup %3113  ;;  %v1943_v29 = vsel %vm540_vm4, %v3112_v27, 0.0 }
 0xce8   : > { %1944 = vadd.xlane.f32.xlu1 %v1943_v29  ;;  %v1940_v30 = vsel %vm540_vm4, %v3114_v28, 0.0 }
 0xce9   : > { %1941 = vadd.xlane.f32.xlu0 %v1940_v30 }
 0xcf9   : > { %2106 = vrot.lane.b32.xlu1 %v3727_v46, %s3972_s7 }
 0xcff   : > { %2182 = vrot.lane.b32.xlu0 %v3727_v46, %s3973_s17  ;;  %s3298_s17 = smov [#allocation8]  }
 0xd00   : > { %s3211_s9 = sshll.u32 %s3298_s17, 4  ;;  %s3212_s9 = int_to_ptr.vmem [resolvable:$false] %s3211_s9 }
 0xd01   : > { %s3213_s11 = scalar_lea.vmem %s3212_s9, 256 }
 0xd69   : > { %v1936_v31 = vpop.xlane.xlu0 %1935 }
 0xd6a   : > { %3115 = vrcp.f32 %v1936_v31  ;;  %v2367_v31 = vrot.slane %v3722_v43, %v1308_v57  ;;  %v2701_v57 = vld [vmem:[%s3939_s6 + $0x48] sm:$0xff] }
 0xd6d   : > { %v1939_v32 = vpop.xlane.xlu1 %1938 }
 0xd6e   : > { %3117 = vrcp.f32 %v1939_v32 }
 0xd71   : > { %v1945_v33 = vpop.xlane.xlu1 %1944 }
 0xd72   : > { %3119 = vrcp.f32 %v1945_v33  ;;  %v1942_v37 = vpop.xlane.xlu0 %1941 }
 0xd73   : > { %3121 = vrcp.f32 %v1942_v37  ;;  %v2372_v37 = vrot.slane %v3722_v43, %v1313_v58  ;;  %v2700_v58 = vld [vmem:[%s3939_s6 + $0x40] sm:$0xff] }
 0xd75   : > { %v2107_v40 = vpop.permute.xlu1 %2106 }
 0xd76   : > { %v2183_v45 = vpop.permute.xlu0 %2182 }
 0xd77   : > { %v3116_v38 = vpop.eup %3115 }
 0xd78   : > { %v1950_v39 = vmul.f32 %v3116_v38, %v3108_v23  ;;  %v2707_v23 = vld [vmem:[%s3939_s6 + $0x78] sm:$0xff] }
 0xd7a   : > { %2944 = vmatmul.mubr.msk.f32.vlgmr.msra.gmra.mxu1 %vm540_vm4, %v1950_v39 }
 0xd7b   : > { %v3118_v41 = vpop.eup %3117  ;;  %2952 = vmatpush3.msra.mxu1 %v2107_v40  ;;  %2953 = vmatprep.mubr.msk.f32.mxu1 %vm3283_vm0, %v3282_v0  ;;  %v2702_v40 = vld [vmem:[%s3939_s6 + $0x50] sm:$0xff] }
 0xd7c   : > { %v1951_v44 = vmul.f32 %v3118_v41, %v3110_v25  ;;  %2961 = vmatprep.subr.mxu1 %v3282_v0  ;;  %v2705_v25 = vld [vmem:[%s3939_s6 + $0x68] sm:$0xff]  ;;  %v2377_v41 = vrot.slane %v3722_v43, %v1318_v5 }
 0xd7e   : > { %2949 = vmatmul.mubr.msk.f32.vlgmr.msra.gmra.mxu0 %vm540_vm4, %v1951_v44 }
 0xd7f   : > { %v3120_v46 = vpop.eup %3119  ;;  %2957 = vmatpush3.msra.mxu0 %v2183_v45  ;;  %2958 = vmatprep.mubr.msk.f32.mxu0 %vm3283_vm0, %v3282_v0 }
 0xd80   : > { %v3122_v47 = vpop.eup %3121  ;;  %v1953_v14 = vmul.f32 %v3120_v46, %v3112_v27  ;;  %2972 = vmatprep.subr.mxu0 %v3282_v0  ;;  %v2703_v27 = vld [vmem:[%s3939_s6 + $0x58] sm:$0xff] }
 0xd81   : > { %v1952_v15 = vmul.f32 %v3122_v47, %v3114_v28 }
 0xd82   : > { %2959 = vmatmul.mubr.msk.f32.vlgmr.msra.gmra.mxu0 %vm540_vm4, %v1953_v14  ;;  %v2455_v14 = vrot.slane %v3722_v43, %v1396_v12 }
 0xd83   : > { %2954 = vmatmul.mubr.msk.f32.vlgmr.msra.gmra.mxu1 %vm540_vm4, %v1952_v15  ;;  %2980 = vmatprep.mubr.msk.f32.mxu0 %vm3283_vm0, %v3282_v0 }
 0xd84   : > { %2969 = vmatprep.mubr.msk.f32.mxu1 %vm3283_vm0, %v3282_v0  ;;  %2962 = vmatpush3.msra.mxu1 %v2695_v10 }
 0xd85   : > { %2963 = vmatprep.subr.mxu1 %v3282_v0  ;;  %2973 = vmatpush3.msra.mxu0 %v2699_v21 }
 0xd86   : > { %2964 = vmatpush3.msra.mxu1 %v2694_v48  ;;  %2974 = vmatprep.subr.mxu0 %v3282_v0 }
 0xd87   : > { %2965 = vmatprep.subr.mxu1 %v3282_v0  ;;  %2975 = vmatpush3.msra.mxu0 %v2698_v34 }
 0xd88   : > { %2966 = vmatpush3.msra.mxu1 %v2693_v49  ;;  %2976 = vmatprep.subr.mxu0 %v3282_v0 }
 0xd89   : > { %2967 = vmatprep.subr.mxu1 %v3282_v0 }
 0xd8a   : > { %2968 = vmatpush3.msra.mxu1 %v2692_v50 }
 0xd8b   : > { %2983 = vmatprep.subr.mxu1 %v3282_v0 }
 0xe3a   : > { %v2026_v51 = vpop.f32.mrf.mxu1 }
 0xe3c   : > { %v2945_v52 = vpop.f32.mrf.mxu1 }
 0xe3e   : > { %v2102_v53 = vpop.f32.mrf.mxu0 }
 0xe3f   : > { %2259 = vrot.lane.b32.xlu1 %v2102_v53, %s3974_s25  ;;  %s2568_s25 = sshll.u32 %s349_s14, 4  ;;  %s2569_s25 = int_to_ptr.vmem [resolvable:$true] %s2568_s25 }
 0xe40   : > { %v2950_v54 = vpop.f32.mrf.mxu0  ;;  %s3207_s7 = scalar_lea.vmem %s2569_s25, 128  ;;  %p3214_p6 = scmp.lt.s32.totalorder %s2569_s25, %s3212_s9 }
 0xe41   : > { %p3208_p11 = scmp.ne.s32.totalorder %s2569_s25, %s3207_s7  ;;  %p3215_p12 = scmp.lt.s32.totalorder %s3213_s11, %s3207_s7 }
 0xe42   : > { %v2254_v55 = vpop.f32.mrf.mxu0 }
 0xe43   : > { %v2178_v56 = vpop.f32.mrf.mxu1  ;;  %2267 = vrot.lane.b32.xlu1 %v2254_v55, %s3975_s15  ;;  %p3209_p1 = pnand %p3208_p11, %p3978_p0  ;;  %p3216_p7 = por %p3215_p12, %p3214_p6 }
 0xe44   : > { %2263 = vrot.lane.b32.xlu0 %v2178_v56, %s3976_s18  ;;  %v2960_v59 = vpop.f32.mrf.mxu0  ;;  %v2546_v56 = vrot.slane %v3722_v43, %v1488_v35 }
 0xe45   : > { %v2955_v60 = vpop.f32.mrf.mxu1  ;;  %p3210_p2 = pneg %p3209_p1 }
 0xe47   : > { %p3217_p9 = pnand %p3216_p7, %p3210_p2 }
 0xeb1   : > { %v2260_v61 = vpop.permute.xlu1 %2259 }
 0xeb2   : > { %v2270_v62 = vsel %vm540_vm4, %v2026_v51, %v2260_v61  ;;  %v2551_v61 = vrot.slane %v3722_v43, %v1493_v36 }
 0xeb5   : > { %v2268_v1 = vpop.permute.xlu1 %2267 }
 0xeb6   : > { %v2264_v63 = vpop.permute.xlu0 %2263 }
 0xeb7   : > { %v2271_v2 = vsel %vm1210_vm5, %v2270_v62, %v2264_v63 }
 0xeb8   : > { %v2272_v3 = vsel %vm1212_vm6, %v2271_v2, %v2268_v1 }
 0xeb9   : > { %2970 = vmatmul.mubr.msk.f32.vlgmr.msra.gmra.mxu1 %vm463_vm3, %v2272_v3 }
 0xeba   : > { %2999 = vmatprep.mubr.msk.f32.mxu1 %vm3283_vm0, %v3282_v0  ;;  %2984 = vmatpush3.msra.mxu1 %v2707_v23 }
 0xebb   : > { %2985 = vmatprep.subr.mxu1 %v3282_v0 }
 0xebc   : > { %2986 = vmatpush3.msra.mxu1 %v2706_v24 }
 0xebd   : > { %2987 = vmatprep.subr.mxu1 %v3282_v0 }
 0xebe   : > { %2988 = vmatpush3.msra.mxu1 %v2705_v25 }
 0xebf   : > { %2989 = vmatprep.subr.mxu1 %v3282_v0 }
 0xec0   : > { %2990 = vmatpush3.msra.mxu1 %v2704_v26 }
 0xec1   : > { %2991 = vmatprep.subr.mxu1 %v3282_v0 }
 0xec2   : > { %2992 = vmatpush3.msra.mxu1 %v2703_v27 }
 0xec3   : > { %2993 = vmatprep.subr.mxu1 %v3282_v0 }
 0xec4   : > { %2994 = vmatpush3.msra.mxu1 %v2702_v40 }
 0xec5   : > { %2995 = vmatprep.subr.mxu1 %v3282_v0 }
 0xec6   : > { %2996 = vmatpush3.msra.mxu1 %v2701_v57 }
 0xec7   : > { %2997 = vmatprep.subr.mxu1 %v3282_v0 }
 0xec8   : > { %2998 = vmatpush3.msra.mxu1 %v2700_v58 }
 0xf79   : > { %v2346_v6 = vpop.f32.mrf.mxu1 }
 0xf7a   : > { %v2347_v7 = vadd.f32 %v2346_v6, %v2276_v4 }
 0xf7b   : > { %v2971_v8 = vpop.f32.mrf.mxu1 }
 0xf7c   : > { %v2350_v9 = vadd.f32 %v2347_v7, %v3716_v42  ;;  %v2697_v42 = vld [vmem:[%s3938_s5 + $0x28] sm:$0xff] }
 0xf7d   : > { %2977 = vmatpush3.msra.mxu0 %v2697_v42 }
 0xf7e   : > { %v2351_v11 = vsel %vm463_vm3, %v2350_v9, 0.0  ;;  %2978 = vmatprep.subr.mxu0 %v3282_v0 }
 0xf7f   : > { %2352 = vadd.xlane.f32.xlu0 %v2351_v11  ;;  %2979 = vmatpush3.msra.mxu0 %v2696_v22 }
0x1008   : > { %v2353_v16 = vpop.xlane.xlu0 %2352 }
0x1009   : > { %v2354_v17 = vmul.f32 0.03125, %v2353_v16 }
0x100b   : > { %v2355_v18 = vsub.f32 %v2350_v9, %v2354_v17 }
0x100d   : > { %v2356_v19 = vmul.f32 %v2355_v18, %v2355_v18 }
0x100f   : > { %v2357_v20 = vsel %vm463_vm3, %v2356_v19, 0.0 }
0x1010   : > { %2358 = vadd.xlane.f32.xlu1 %v2357_v20 }
0x1099   : > { %v2359_v28 = vpop.xlane.xlu1 %2358 }
0x109a   : > { %v2360_v29 = vmul.f32 0.03125, %v2359_v28 }
0x109c   : > { %v2361_v30 = vadd.f32 1e-05, %v2360_v29 }
0x109e   : > { %3123 = vrsqrt.f32 %v2361_v30 }
0x10ab   : > { %v3124_v32 = vpop.eup %3123 }
0x10ac   : > { %v2363_v33 = vmul.f32 %v3124_v32, %v2355_v18 }
0x10ae   : > { %v2368_v38 = vmul.f32 %v2367_v31, %v2363_v33 }
0x10b0   : > { %v2373_v39 = vadd.f32 %v2372_v37, %v2368_v38 }
0x10b2   : > { %2981 = vmatmul.mubr.msk.f32.vlgmr.msra.gmra.mxu0 %vm463_vm3, %v2373_v39 }
0x1172   : > { %v2447_v44 = vpop.f32.mrf.mxu0 }
0x1173   : > { %v2448_v45 = vadd.f32 %v2447_v44, %v2377_v41 }
0x1174   : > { %v2982_v46 = vpop.f32.mrf.mxu0 }
0x1175   : > { %v2451_v47 = vmax.f32 %v2448_v45, 0.0 }
0x1177   : > { %3000 = vmatmul.mubr.msk.f32.vlgmr.msra.gmra.mxu1 %vm1398_vm7, %v2451_v47 }
0x1237   : > { %v2525_v15 = vpop.f32.mrf.mxu1 }
0x1238   : > { %v2526_v10 = vadd.f32 %v2525_v15, %v2455_v14 }
0x1239   : > { %v3001_v48 = vpop.f32.mrf.mxu1 }
0x123a   : > { %v2529_v49 = vadd.f32 %v2526_v10, %v2373_v39 }
0x123c   : > { %v2530_v0 = vsel %vm463_vm3, %v2529_v49, 0.0 }
0x123d   : > { %2531 = vadd.xlane.f32.xlu0 %v2530_v0 }
0x12c6   : > { %v2532_v5 = vpop.xlane.xlu0 %2531 }
0x12c7   : > { %v2533_v50 = vmul.f32 0.03125, %v2532_v5 }
0x12c9   : > { %v2534_v51 = vsub.f32 %v2529_v49, %v2533_v50 }
0x12cb   : > { %v2535_v52 = vmul.f32 %v2534_v51, %v2534_v51 }
0x12cd   : > { %v2536_v53 = vsel %vm463_vm3, %v2535_v52, 0.0 }
0x12ce   : > { %2537 = vadd.xlane.f32.xlu0 %v2536_v53 }
0x1357   : > { %v2538_v54 = vpop.xlane.xlu0 %2537 }
0x1358   : > { %v2539_v55 = vmul.f32 0.03125, %v2538_v54 }
0x135a   : > { %v2540_v12 = vadd.f32 1e-05, %v2539_v55 }
0x135c   : > { %3125 = vrsqrt.f32 %v2540_v12 }
0x1369   : > { %v3126_v59 = vpop.eup %3125 }
0x136a   : > { %v2542_v60 = vmul.f32 %v3126_v59, %v2534_v51 }
0x136c   : > { %v2547_v62 = vmul.f32 %v2546_v56, %v2542_v60 }
0x136e   : > { %v2552_v63 = vadd.f32 %v2551_v61, %v2547_v62 }
0x1370   : > { %2553 = vst.msk [vmem:[%s349_s14] sm:$0xff] %vm463_vm3, %v2552_v63 }
0x1371   : > { %3220 = shalt.err (!%p3217_p9)
}
0x1372   : > { %s3221_s13 = scalar_lea.hbm %s2566_s24, 128  ;;  %s3225_s26 = scalar_lea.hbm %s3941_s8, 256 }
0x1373   : > { %p3222_p13 = scmp.ne.s32.totalorder %s2566_s24, %s3221_s13  ;;  %p3226_p4 = scmp.lt.s32.totalorder %s2566_s24, %s3941_s8 }
0x1374   : > { %p3227_p8 = scmp.lt.s32.totalorder %s3225_s26, %s3221_s13 }
0x1375   : > { %p3223_p5 = pnand %p3222_p13, %p3978_p0 }
0x1376   : > { %p3228_p3 = por %p3227_p8, %p3226_p4 }
0x1377   : > { %p3224_p10 = pneg %p3223_p5 }
0x1379   : > { %p3229_p11 = pnand %p3228_p3, %p3224_p10 }
0x137b   : > { %3232 = shalt.err (!%p3229_p11)
}
0x137c   : > { %3012 = dma.vmem_to_hbm [thread:$0]  (%p3978_p0), %s2569_s25, 128, %s2566_s24, %s2555_s19  }
0x137d PF: > { %s2580_s20 = sand.u32 1, %s3263_s27   ;;  %p3979_p1 = scmp.ne.s32.totalorder %s3957_s12, 0 }
0x137e   : > { %p3980_p2 = scmp.ge.s32.totalorder %s3275_s30, 2  ;;  %s2581_s14 = scalar_lea.sflag [#allocation4], %s2580_s20 }
0x1380   : > { %p3026_p6 = pnand %p3980_p2, %p3979_p1 }
0x1382   : > { %p3027_p12 = pneg %p3026_p6 }
0x1384   : > { %3258 = dma.done.wait (%p3027_p12), %s2581_s14, 128  }
0x1385   : > { %3260 = vsyncadd (%p3027_p12), %s2581_s14, 4294967168  ;;  %s3981_s15 = sld [smem:[#allocation12_spill]]  ;;  %p22_p7 = scmp.ge.s32.totalorder %s3416_s10, 4  }
0x1386   : > { %s3982_s27 = smov %s3267_s28  ;;  %s3983_s28 = smov %s3271_s29 }
0x1387   : > { %s3985_s30 = smov %s3416_s10  ;;  %24 = sbr.rel (!%p22_p7) target bundleno = 9 (0x9), region = 110 }
0x138b   : > { %s3984_s29 = smov %s3981_s15 }
0x138c   :  { %2586 = vsyncpa [#allocation3], 1 }
0x138d   :  { %2588 = vsyncpa [#allocation3 + $0x1], 1 }
0x138e   :  { %2589 = vsyncpa [#allocation6], 1 }
0x138f   :  { %2590 = vsyncpa [#allocation4], 1 }
0x1390   :  { %2592 = vsyncpa [#allocation4 + $0x1], 1 }

</bundles_post_ra>
